<compile_context>
chip_gen: v7x
topology: tpu7x:2x2x1
jax: 0.10.0
libtpu: 0.0.40
codegen_flags: <defaults>
</compile_context>

<pallas_src>
import functools

import jax
import jax.numpy as jnp
from jax.experimental import pallas as pl
from jax.experimental.pallas import tpu as pltpu

# Logical (PyTorch) dims.
D_IN, D_H, D_OUT = 800, 500, 2
# Lane-aligned padded dims for hidden / output features (multiples of 128).
D_H_P, D_OUT_P = 512, 128


def _round_up(n, m):
    return ((n + m - 1) // m) * m


def _choose_tiling(batch, tile_m):
    """Pick (tm, padded_batch).

    * Rows aligned to 16 (bf16 output packs 16 rows per sublane tile).
    * Large batches: tm is a multiple of 128, capped by `tile_m` and by half
      the batch so the grid always has >= 2 steps (keeps both v7x TensorCores
      busy via the "parallel" axis), preferring tiles whose batch-padding
      waste is <= ~12.5%.
    """
    b_al = _round_up(batch, 16)
    if b_al <= 256:
        return b_al, b_al                      # single small tile, grid = 1
    tm_max = max(128, min(_round_up(tile_m, 128),
                          _round_up((b_al + 1) // 2, 128)))
    best_tm, best_pad = 128, _round_up(b_al, 128)
    for cand in range(tm_max, 127, -128):      # largest tile first
        padded = _round_up(b_al, cand)
        if padded - b_al <= padded // 8:       # waste <= 12.5% -> take it
            return cand, padded
        if padded < best_pad:
            best_tm, best_pad = cand, padded
    return best_tm, best_pad


def mlp_kernel(x_ref, w1_ref, b1_ref, w2_ref, b2_ref, w3_ref, b3_ref, o_ref):
    # x arrives as f32 straight from HBM (no pre-pad / pre-cast XLA pass);
    # cast to bf16 on the VPU just before the MXU.  K = 800 (full width).
    x = x_ref[...].astype(jnp.bfloat16)
    # Layer 1: [tm, 800](bf16) @ [800, 512](bf16) -> f32 acc; bias+ReLU in f32.
    h1 = jnp.dot(x, w1_ref[...], preferred_element_type=jnp.float32)
    h1 = jnp.maximum(h1 + b1_ref[...], 0.0)
    # Layer 2: [tm, 512] @ [512, 512]
    h2 = jnp.dot(h1.astype(jnp.bfloat16), w2_ref[...],
                 preferred_element_type=jnp.float32)
    h2 = jnp.maximum(h2 + b2_ref[...], 0.0)
    # Layer 3: [tm, 512] @ [512, 128]  (N padded to 128 -> unmasked lane-dense
    # stores).  Final store in bf16 halves the padded-output HBM traffic.
    out = jnp.dot(h2.astype(jnp.bfloat16), w3_ref[...],
                  preferred_element_type=jnp.float32)
    o_ref[...] = (out + b3_ref[...]).astype(o_ref.dtype)


def prepare_params(raw_params):
    """Pad params to lane-aligned shapes, cast weights to bf16 (biases f32).

    raw_params: (w1t [800,500], b1 [1,500], w2t [500,500], b2 [1,500],
                 w3t [500,2],   b3 [1,2]), float32.  Weights are pre-transposed
                 to [in, out] so the kernel computes x @ W.T + b like PyTorch.
    Zero-fill so padded K/N columns contribute exactly 0.
    """
    w1t, b1, w2t, b2, w3t, b3 = raw_params

    def pad_cast(a, shape, dtype):
        out = jnp.zeros(shape, dtype)
        return out.at[: a.shape[0], : a.shape[1]].set(a.astype(dtype))

    return (
        pad_cast(w1t, (D_IN, D_H_P), jnp.bfloat16),   # K = 800 stays unpadded
        pad_cast(b1, (1, D_H_P), jnp.float32),
        pad_cast(w2t, (D_H_P, D_H_P), jnp.bfloat16),
        pad_cast(b2, (1, D_H_P), jnp.float32),
        pad_cast(w3t, (D_H_P, D_OUT_P), jnp.bfloat16),
        pad_cast(b3, (1, D_OUT_P), jnp.float32),
    )


@functools.partial(jax.jit, static_argnames=("tile_m",))
def discriminator_forward(x, padded_params, *, tile_m=1024):
    """x: [B, 800] float32 -> logits [B, 2] float32.

    GAN note: at small batch the per-call floor is the ~1.3 MB weight DMA plus
    launch overhead — concatenate real+fake rows into a single call.
    """
    w1p, b1p, w2p, b2p, w3p, b3p = padded_params
    B = x.shape[0]

    tm, B_pad = _choose_tiling(B, tile_m)
    grid = (B_pad // tm,)

    # Only pad the (small) batch remainder; x stays f32 / full-width, so for
    # exact-multiple batches there is zero extra HBM traffic before the kernel.
    x_p = x if B_pad == B else jnp.pad(x, ((0, B_pad - B), (0, 0)))

    def resident(shape):
        # Weights/biases: same block every grid step -> VMEM-resident.
        return pl.BlockSpec(shape, lambda i: (0, 0))

    flops = 2 * B_pad * (D_IN * D_H_P + D_H_P * D_H_P + D_H_P * D_OUT_P)
    bytes_accessed = (
        x_p.size * 4
        + (w1p.size + w2p.size + w3p.size) * 2
        + (b1p.size + b2p.size + b3p.size) * 4
        + B_pad * D_OUT_P * 2
    )

    out_p = pl.pallas_call(
        mlp_kernel,
        out_shape=jax.ShapeDtypeStruct((B_pad, D_OUT_P), jnp.bfloat16),
        grid_spec=pltpu.PrefetchScalarGridSpec(
            num_scalar_prefetch=0,
            grid=grid,
            in_specs=[
                pl.BlockSpec((tm, D_IN), lambda i: (i, 0)),
                resident((D_IN, D_H_P)),
                resident((1, D_H_P)),
                resident((D_H_P, D_H_P)),
                resident((1, D_H_P)),
                resident((D_H_P, D_OUT_P)),
                resident((1, D_OUT_P)),
            ],
            out_specs=pl.BlockSpec((tm, D_OUT_P), lambda i: (i, 0)),
        ),
        compiler_params=pltpu.CompilerParams(
            dimension_semantics=("parallel",),
            vmem_limit_bytes=48 * 1024 * 1024,
        ),
        cost_estimate=pl.CostEstimate(
            flops=flops, transcendentals=0, bytes_accessed=bytes_accessed),
    )(x_p, w1p, b1p, w2p, b2p, w3p, b3p)

    # Logical logits; return f32 to match the PyTorch module's output dtype.
    return out_p[:B, :D_OUT].astype(jnp.float32)


def init_linear_params(key, in_features, out_features):
    """Mimic PyTorch nn.Linear default init: U(-1/sqrt(in), 1/sqrt(in)).
    Weight returned already transposed: [in_features, out_features]."""
    kw, kb = jax.random.split(key)
    bound = 1.0 / jnp.sqrt(jnp.float32(in_features))
    w_t = jax.random.uniform(kw, (in_features, out_features), jnp.float32,
                             minval=-bound, maxval=bound)
    b = jax.random.uniform(kb, (1, out_features), jnp.float32,
                           minval=-bound, maxval=bound)
    return w_t, b


def reference_forward_f32(x, raw_params):
    w1t, b1, w2t, b2, w3t, b3 = raw_params
    h1 = jnp.maximum(x @ w1t + b1, 0.0)
    h2 = jnp.maximum(h1 @ w2t + b2, 0.0)
    return h2 @ w3t + b3


def reference_forward_bf16(x, raw_params):
    """Emulates kernel numerics: bf16 matmul inputs, f32 acc, bf16 final store."""
    w1t, b1, w2t, b2, w3t, b3 = raw_params
    bf = jnp.bfloat16
    h1 = jnp.maximum(
        jnp.dot(x.astype(bf), w1t.astype(bf),
                preferred_element_type=jnp.float32) + b1, 0.0)
    h2 = jnp.maximum(
        jnp.dot(h1.astype(bf), w2t.astype(bf),
                preferred_element_type=jnp.float32) + b2, 0.0)
    out = jnp.dot(h2.astype(bf), w3t.astype(bf),
                  preferred_element_type=jnp.float32) + b3
    return out.astype(bf).astype(jnp.float32)


if __name__ == "__main__":
    key = jax.random.PRNGKey(0)
    kx, k1, k2, k3 = jax.random.split(key, 4)

    w1t, b1 = init_linear_params(k1, D_IN, D_H)
    w2t, b2 = init_linear_params(k2, D_H, D_H)
    w3t, b3 = init_linear_params(k3, D_H, D_OUT)
    raw_params = (w1t, b1, w2t, b2, w3t, b3)
    padded_params = prepare_params(raw_params)

    # Tiny batch (single tile, grid=1) and a multi-tile batch (tm=256, grid=2).
    for B in (8, 512):
        x = jax.random.normal(jax.random.fold_in(kx, B), (B, D_IN), jnp.float32)
        out = jax.block_until_ready(discriminator_forward(x, padded_params))
        assert out.shape == (B, D_OUT), out.shape
        assert out.dtype == jnp.float32, out.dtype

        # Check against an exact emulation of the kernel's bf16/f32 numerics...
        ref_bf16 = reference_forward_bf16(x, raw_params)
        assert jnp.allclose(out, ref_bf16, atol=1e-2, rtol=1e-2), (
            f"B={B}: mismatch vs bf16-emulated reference, max abs diff = "
            f"{float(jnp.max(jnp.abs(out - ref_bf16)))}")
        # ... and against the pure-f32 reference with bf16-appropriate slack.
        ref_f32 = reference_forward_f32(x, raw_params)
        assert jnp.allclose(out, ref_f32, atol=5e-2, rtol=5e-2), (
            f"B={B}: mismatch vs f32 reference, max abs diff = "
            f"{float(jnp.max(jnp.abs(out - ref_f32)))}")

    print("KERNEL_OK")
</pallas_src>

<mosaic_0001>
module attributes {stable_mosaic.version = 11 : i64} {
  func.func @mlp_kernel(%arg0: i32, %arg1: memref<16x800xf32, #tpu.memory_space<vmem>>, %arg2: memref<800x512xbf16, #tpu.memory_space<vmem>>, %arg3: memref<1x512xf32, #tpu.memory_space<vmem>>, %arg4: memref<512x512xbf16, #tpu.memory_space<vmem>>, %arg5: memref<1x512xf32, #tpu.memory_space<vmem>>, %arg6: memref<512x128xbf16, #tpu.memory_space<vmem>>, %arg7: memref<1x128xf32, #tpu.memory_space<vmem>>, %arg8: memref<16x128xbf16, #tpu.memory_space<vmem>>) attributes {dimension_semantics = [#tpu.dimension_semantics<parallel>], iteration_bounds = array<i64: 1>, scalar_prefetch = 0 : i64, scratch_operands = 0 : i64, tpu.core_type = #tpu.core_type<tc>, window_params = [{transform_indices = @transform_0, window_bounds = array<i64: 16, 800>}, {pipeline_mode = #tpu.pipeline_mode<synchronous>, transform_indices = @transform_1, window_bounds = array<i64: 800, 512>}, {pipeline_mode = #tpu.pipeline_mode<synchronous>, transform_indices = @transform_2, window_bounds = array<i64: 1, 512>}, {pipeline_mode = #tpu.pipeline_mode<synchronous>, transform_indices = @transform_3, window_bounds = array<i64: 512, 512>}, {pipeline_mode = #tpu.pipeline_mode<synchronous>, transform_indices = @transform_4, window_bounds = array<i64: 1, 512>}, {pipeline_mode = #tpu.pipeline_mode<synchronous>, transform_indices = @transform_5, window_bounds = array<i64: 512, 128>}, {pipeline_mode = #tpu.pipeline_mode<synchronous>, transform_indices = @transform_6, window_bounds = array<i64: 1, 128>}, {transform_indices = @transform_7, window_bounds = array<i64: 16, 128>}]} {
    %c0 = arith.constant 0 : index
    %c0_0 = arith.constant 0 : index
    %0 = vector.load %arg1[%c0, %c0_0] : memref<16x800xf32, #tpu.memory_space<vmem>>, vector<16x800xf32>
    %1 = arith.truncf %0 : vector<16x800xf32> to vector<16x800xbf16>
    %c0_1 = arith.constant 0 : index
    %c0_2 = arith.constant 0 : index
    %2 = vector.load %arg2[%c0_1, %c0_2] : memref<800x512xbf16, #tpu.memory_space<vmem>>, vector<800x512xbf16>
    %cst = arith.constant dense<0.000000e+00> : vector<16x512xf32>
    %3 = tpu.matmul %1, %2, %cst {dimension_numbers = #tpu.dot_dimension_numbers<[1], [0], [0], [1], [0, 0, 1, 1], [], []>} : vector<16x800xbf16>, vector<800x512xbf16>, vector<16x512xf32> -> vector<16x512xf32>
    %c0_3 = arith.constant 0 : index
    %c0_4 = arith.constant 0 : index
    %4 = vector.load %arg3[%c0_3, %c0_4] : memref<1x512xf32, #tpu.memory_space<vmem>>, vector<1x512xf32>
    %5 = vector.broadcast %4 : vector<1x512xf32> to vector<16x512xf32>
    %6 = arith.addf %3, %5 : vector<16x512xf32>
    %cst_5 = arith.constant 0.000000e+00 : f32
    %7 = vector.broadcast %cst_5 : f32 to vector<16x512xf32>
    %8 = arith.maximumf %6, %7 : vector<16x512xf32>
    %9 = arith.truncf %8 : vector<16x512xf32> to vector<16x512xbf16>
    %c0_6 = arith.constant 0 : index
    %c0_7 = arith.constant 0 : index
    %10 = vector.load %arg4[%c0_6, %c0_7] : memref<512x512xbf16, #tpu.memory_space<vmem>>, vector<512x512xbf16>
    %cst_8 = arith.constant dense<0.000000e+00> : vector<16x512xf32>
    %11 = tpu.matmul %9, %10, %cst_8 {dimension_numbers = #tpu.dot_dimension_numbers<[1], [0], [0], [1], [0, 0, 1, 1], [], []>} : vector<16x512xbf16>, vector<512x512xbf16>, vector<16x512xf32> -> vector<16x512xf32>
    %c0_9 = arith.constant 0 : index
    %c0_10 = arith.constant 0 : index
    %12 = vector.load %arg5[%c0_9, %c0_10] : memref<1x512xf32, #tpu.memory_space<vmem>>, vector<1x512xf32>
    %13 = vector.broadcast %12 : vector<1x512xf32> to vector<16x512xf32>
    %14 = arith.addf %11, %13 : vector<16x512xf32>
    %cst_11 = arith.constant 0.000000e+00 : f32
    %15 = vector.broadcast %cst_11 : f32 to vector<16x512xf32>
    %16 = arith.maximumf %14, %15 : vector<16x512xf32>
    %17 = arith.truncf %16 : vector<16x512xf32> to vector<16x512xbf16>
    %c0_12 = arith.constant 0 : index
    %c0_13 = arith.constant 0 : index
    %18 = vector.load %arg6[%c0_12, %c0_13] : memref<512x128xbf16, #tpu.memory_space<vmem>>, vector<512x128xbf16>
    %cst_14 = arith.constant dense<0.000000e+00> : vector<16x128xf32>
    %19 = tpu.matmul %17, %18, %cst_14 {dimension_numbers = #tpu.dot_dimension_numbers<[1], [0], [0], [1], [0, 0, 1, 1], [], []>} : vector<16x512xbf16>, vector<512x128xbf16>, vector<16x128xf32> -> vector<16x128xf32>
    %c0_15 = arith.constant 0 : index
    %c0_16 = arith.constant 0 : index
    %20 = vector.load %arg7[%c0_15, %c0_16] : memref<1x128xf32, #tpu.memory_space<vmem>>, vector<1x128xf32>
    %21 = vector.broadcast %20 : vector<1x128xf32> to vector<16x128xf32>
    %22 = arith.addf %19, %21 : vector<16x128xf32>
    %23 = arith.truncf %22 : vector<16x128xf32> to vector<16x128xbf16>
    %c0_17 = arith.constant 0 : index
    %c0_18 = arith.constant 0 : index
    %24 = vector.load %arg8[%c0_17, %c0_18] : memref<16x128xbf16, #tpu.memory_space<vmem>>, vector<16x128xbf16>
    tpu.vector_store %arg8[%c0_17, %c0_18], %23 {strides = array<i32>} : memref<16x128xbf16, #tpu.memory_space<vmem>>, vector<16x128xbf16>,
    return
  }
  func.func @transform_0(%arg0: i32) -> (i32, i32) {
    %c0_i32 = arith.constant 0 : i32
    %c0_i32_0 = arith.constant 0 : i32
    return %arg0, %c0_i32 : i32, i32
  }
  func.func @transform_1(%arg0: i32) -> (i32, i32) {
    %c0_i32 = arith.constant 0 : i32
    %c0_i32_0 = arith.constant 0 : i32
    %c0_i32_1 = arith.constant 0 : i32
    return %c0_i32, %c0_i32_0 : i32, i32
  }
  func.func @transform_2(%arg0: i32) -> (i32, i32) {
    %c0_i32 = arith.constant 0 : i32
    %c0_i32_0 = arith.constant 0 : i32
    %c0_i32_1 = arith.constant 0 : i32
    return %c0_i32, %c0_i32_0 : i32, i32
  }
  func.func @transform_3(%arg0: i32) -> (i32, i32) {
    %c0_i32 = arith.constant 0 : i32
    %c0_i32_0 = arith.constant 0 : i32
    %c0_i32_1 = arith.constant 0 : i32
    return %c0_i32, %c0_i32_0 : i32, i32
  }
  func.func @transform_4(%arg0: i32) -> (i32, i32) {
    %c0_i32 = arith.constant 0 : i32
    %c0_i32_0 = arith.constant 0 : i32
    %c0_i32_1 = arith.constant 0 : i32
    return %c0_i32, %c0_i32_0 : i32, i32
  }
  func.func @transform_5(%arg0: i32) -> (i32, i32) {
    %c0_i32 = arith.constant 0 : i32
    %c0_i32_0 = arith.constant 0 : i32
    %c0_i32_1 = arith.constant 0 : i32
    return %c0_i32, %c0_i32_0 : i32, i32
  }
  func.func @transform_6(%arg0: i32) -> (i32, i32) {
    %c0_i32 = arith.constant 0 : i32
    %c0_i32_0 = arith.constant 0 : i32
    %c0_i32_1 = arith.constant 0 : i32
    return %c0_i32, %c0_i32_0 : i32, i32
  }
  func.func @transform_7(%arg0: i32) -> (i32, i32) {
    %c0_i32 = arith.constant 0 : i32
    %c0_i32_0 = arith.constant 0 : i32
    return %arg0, %c0_i32 : i32, i32
  }
}

</mosaic_0001>

<bundles_post_ra>
// kernel: discriminator_forward.1
= control target key start
LH: loop header
LB: loop body
LE: loop exit
PB: predicated region body
PF: predicated region fallthrough
CT: control target
= control target key end

     0   :  { %12 = vsyncpa [#allocation3], 0  ;;  %s4243_s0 = inlined_call_operand.vmem [shape: f32[16,800], index: 0, kind: input, shape index: {}]   ;;  %s4244_s1 = inlined_call_operand.hbm [shape: bf16[800,512], index: 1, kind: input, shape index: {}]   ;;  %s4245_s2 = inlined_call_operand.vmem [shape: f32[1,512], index: 2, kind: input, shape index: {}]   ;;  %s4246_s3 = inlined_call_operand.hbm [shape: bf16[512,512], index: 3, kind: input, shape index: {}]   ;;  %s4247_s4 = inlined_call_operand.vmem [shape: f32[1,512], index: 4, kind: input, shape index: {}]   ;;  %s4248_s5 = inlined_call_operand.hbm [shape: bf16[512,128], index: 5, kind: input, shape index: {}]   ;;  %s4249_s6 = inlined_call_operand.vmem [shape: f32[1,128], index: 6, kind: input, shape index: {}]   ;;  %s4250_s7 = inlined_call_operand.vmem [shape: bf16[16,128], index: 7, kind: output, shape index: {}]  }
   0x1   :  { %13 = vsyncpa [#allocation5], 0  ;;  %s4072_s24 = smov [#allocation4]   ;;  %s4073_s26 = smov [#allocation2]  }
   0x2   :  { %s35_s25 = sshll.u32 %s4072_s24, 4  ;;  %s21_s27 = sshll.u32 %s4073_s26, 4  ;;  %s36_s25 = int_to_ptr.vmem [resolvable:$true] %s35_s25  ;;  %s4120_s27 = int_to_ptr.vmem [resolvable:$true] %s21_s27 }
   0x3   :  { %s4002_s30 = scalar_lea.hbm %s4246_s3, 16384 }
   0x4   :  { %p4003_p0 = scmp.ne.s32.totalorder %s4246_s3, %s4002_s30  ;;  %p4006_p1 = scmp.lt.u32.totalorder %s4002_s30, %s4246_s3 }
   0x6   :  { %p4008_p2 = pnand %p4006_p1, %p4003_p0 }
   0x8   :  { %4011 = shalt.err (!%p4008_p2)
}
   0x9   :  { %s4012_s12 = scalar_lea.vmem %s36_s25, 16384  ;;  %p4017_p4 = scmp.lt.s32.totalorder %s36_s25, %s36_s25 }
   0xa   :  { %p4013_p3 = scmp.ne.s32.totalorder %s36_s25, %s4012_s12  ;;  %p4018_p5 = scmp.lt.s32.totalorder %s4012_s12, %s4012_s12 }
   0xc   :  { %p4019_p6 = por %p4018_p5, %p4017_p4 }
   0xe   :  { %p4020_p7 = pnand %p4019_p6, %p4013_p3 }
  0x10   :  { %4023 = shalt.err (!%p4020_p7)
}
  0x11   :  { %s4074_s13 = smov 256   ;;  %s4075_s14 = smov 16  }
  0x12   :  { %41 = dma.hbm_to_vmem [thread:$0]  %s4246_s3, 16384, %s36_s25, [#allocation5], %s4074_s13, %s4074_s13, %s4075_s14  }
  0x13   :  { %s4024_s19 = scalar_lea.hbm %s4244_s1, 25600 }
  0x14   :  { %p4025_p8 = scmp.ne.s32.totalorder %s4244_s1, %s4024_s19  ;;  %p4028_p9 = scmp.lt.u32.totalorder %s4024_s19, %s4244_s1 }
  0x16   :  { %p4030_p10 = pnand %p4028_p9, %p4025_p8 }
  0x18   :  { %4033 = shalt.err (!%p4030_p10)
}
  0x19   :  { %s4034_s24 = scalar_lea.vmem %s4120_s27, 25600  ;;  %p4039_p12 = scmp.lt.s32.totalorder %s4120_s27, %s4120_s27 }
  0x1a   :  { %p4035_p11 = scmp.ne.s32.totalorder %s4120_s27, %s4034_s24  ;;  %p4040_p13 = scmp.lt.s32.totalorder %s4034_s24, %s4034_s24 }
  0x1c   :  { %p4041_p0 = por %p4040_p13, %p4039_p12 }
  0x1e   :  { %p4042_p1 = pnand %p4041_p0, %p4035_p11 }
  0x20   :  { %4045 = shalt.err (!%p4042_p1)
}
  0x21   :  { %27 = dma.hbm_to_vmem [thread:$0]  %s4244_s1, 25600, %s4120_s27, [#allocation3], %s4074_s13, %s4074_s13, %s4075_s14  }
  0x22   :  { %s4076_s26 = smov [#allocation6]   ;;  %s4046_s8 = scalar_lea.hbm %s4248_s5, 4096 }
  0x23   :  { %s49_s28 = sshll.u32 %s4076_s26, 4  ;;  %p4047_p2 = scmp.ne.s32.totalorder %s4248_s5, %s4046_s8  ;;  %s50_s28 = int_to_ptr.vmem [resolvable:$true] %s49_s28 }
  0x24   :  { %p4050_p3 = scmp.lt.u32.totalorder %s4046_s8, %s4248_s5 }
  0x26   :  { %p4052_p4 = pnand %p4050_p3, %p4047_p2 }
  0x28   :  { %4055 = shalt.err (!%p4052_p4)
}
  0x29   :  { %s4056_s15 = scalar_lea.vmem %s50_s28, 4096  ;;  %p4061_p6 = scmp.lt.s32.totalorder %s50_s28, %s50_s28 }
  0x2a   :  { %p4057_p5 = scmp.ne.s32.totalorder %s50_s28, %s4056_s15  ;;  %p4062_p7 = scmp.lt.s32.totalorder %s4056_s15, %s4056_s15 }
  0x2c   :  { %p4063_p8 = por %p4062_p7, %p4061_p6 }
  0x2e   :  { %p4064_p9 = pnand %p4063_p8, %p4057_p5 }
  0x30   :  { %4067 = shalt.err (!%p4064_p9)
}
  0x31   :  { %s4077_s1 = smov 64   ;;  %s4078_s27 = smov 4  }
  0x32   :  { %55 = dma.hbm_to_vmem [thread:$0]  %s4248_s5, 4096, %s50_s28, [#allocation5], %s4077_s1, %s4077_s1, %s4078_s27  }
  0x33   :  { %4068 = dma.done.wait [#allocation3], 25600  }
  0x34   :  { %4069 = vsyncadd [#allocation3], 4294941696 }
  0x35   :  { %4070 = dma.done.wait [#allocation5], 20480  }
  0x36   :  { %4071 = vsyncadd [#allocation5], 4294946816  ;;  %v3478_v0 = vld [vmem:[#allocation2 + $0x4] ss:$16 sps:$4 sm:$0xff]   ;;  %v3480_v1 = vld [vmem:[#allocation2 + $0xc] ss:$16 sps:$4 sm:$0xff]  }
  0x37   :  { %1315 = vmatprep.subr.bf16.mxu0 %v3478_v0  ;;  %v3482_v2 = vld [vmem:[#allocation2] ss:$16 sps:$4 sm:$0xff]   ;;  %v3483_v3 = vld [vmem:[#allocation2 + $0x8] ss:$16 sps:$4 sm:$0xff]   ;;  %1487 = vmatprep.subr.bf16.mxu1 %v3480_v1  ;;  %v3484_v4 = vld [vmem:[#allocation2 + $0x24] ss:$16 sps:$4 sm:$0xff]  }
  0x38   :  { %1316 = vmatpush1.bf16.msra.mxu0 %v3482_v2  ;;  %1488 = vmatpush1.bf16.msra.mxu1 %v3483_v3  ;;  %v3486_v5 = vld [vmem:[#allocation2 + $0x2c] ss:$16 sps:$4 sm:$0xff]   ;;  %v3488_v6 = vld [vmem:[#allocation2 + $0x20] ss:$16 sps:$4 sm:$0xff]   ;;  %v3489_v7 = vld [vmem:[#allocation2 + $0x28] ss:$16 sps:$4 sm:$0xff]  }
  0x39   :  { %1317 = vmatprep.subr.bf16.mxu0 %v3484_v4  ;;  %1489 = vmatprep.subr.bf16.mxu1 %v3486_v5  ;;  %v3490_v8 = vld [vmem:[#allocation2 + $0x44] ss:$16 sps:$4 sm:$0xff]   ;;  %v3492_v9 = vld [vmem:[#allocation2 + $0x4c] ss:$16 sps:$4 sm:$0xff]   ;;  %v3494_v10 = vld [vmem:[#allocation2 + $0x40] ss:$16 sps:$4 sm:$0xff]  }
  0x3a   :  { %v3495_v11 = vld [vmem:[#allocation2 + $0x48] ss:$16 sps:$4 sm:$0xff]   ;;  %v3496_v12 = vld [vmem:[#allocation2 + $0x64] ss:$16 sps:$4 sm:$0xff]   ;;  %v3498_v13 = vld [vmem:[#allocation2 + $0x6c] ss:$16 sps:$4 sm:$0xff]  }
  0x3b   :  { %v3500_v14 = vld [vmem:[#allocation2 + $0x60] ss:$16 sps:$4 sm:$0xff]   ;;  %v3501_v15 = vld [vmem:[#allocation2 + $0x68] ss:$16 sps:$4 sm:$0xff]   ;;  %v3502_v16 = vld [vmem:[#allocation2 + $0x84] ss:$16 sps:$4 sm:$0xff]  }
  0x3c   :  { %1318 = vmatpush1.bf16.msra.mxu0 %v3488_v6  ;;  %1490 = vmatpush1.bf16.msra.mxu1 %v3489_v7  ;;  %v3504_v17 = vld [vmem:[#allocation2 + $0x8c] ss:$16 sps:$4 sm:$0xff]   ;;  %v3506_v18 = vld [vmem:[#allocation2 + $0x80] ss:$16 sps:$4 sm:$0xff]   ;;  %v3507_v19 = vld [vmem:[#allocation2 + $0x88] ss:$16 sps:$4 sm:$0xff]  }
  0x3d   :  { %1319 = vmatprep.subr.bf16.mxu0 %v3490_v8  ;;  %1491 = vmatprep.subr.bf16.mxu1 %v3492_v9  ;;  %v3508_v20 = vld [vmem:[#allocation2 + $0xa4] ss:$16 sps:$4 sm:$0xff]   ;;  %v3510_v21 = vld [vmem:[#allocation2 + $0xac] ss:$16 sps:$4 sm:$0xff]   ;;  %v3512_v22 = vld [vmem:[#allocation2 + $0xa0] ss:$16 sps:$4 sm:$0xff]  }
  0x3e   :  { %v3513_v23 = vld [vmem:[#allocation2 + $0xa8] ss:$16 sps:$4 sm:$0xff]   ;;  %v3514_v24 = vld [vmem:[#allocation2 + $0xc4] ss:$16 sps:$4 sm:$0xff]   ;;  %v3516_v25 = vld [vmem:[#allocation2 + $0xcc] ss:$16 sps:$4 sm:$0xff]  }
  0x3f   :  { %v3518_v26 = vld [vmem:[#allocation2 + $0xc0] ss:$16 sps:$4 sm:$0xff]   ;;  %v3519_v27 = vld [vmem:[#allocation2 + $0xc8] ss:$16 sps:$4 sm:$0xff]   ;;  %v3520_v28 = vld [vmem:[#allocation2 + $0xe4] ss:$16 sps:$4 sm:$0xff]  }
  0x40   :  { %1320 = vmatpush1.bf16.msra.mxu0 %v3494_v10  ;;  %1492 = vmatpush1.bf16.msra.mxu1 %v3495_v11  ;;  %v3522_v29 = vld [vmem:[#allocation2 + $0xec] ss:$16 sps:$4 sm:$0xff]   ;;  %v3524_v30 = vld [vmem:[#allocation2 + $0xe0] ss:$16 sps:$4 sm:$0xff]   ;;  %v3525_v31 = vld [vmem:[#allocation2 + $0xe8] ss:$16 sps:$4 sm:$0xff]  }
  0x41   :  { %1321 = vmatprep.subr.bf16.mxu0 %v3496_v12  ;;  %1493 = vmatprep.subr.bf16.mxu1 %v3498_v13  ;;  %v3526_v32 = vld [vmem:[#allocation2 + $0x104] ss:$16 sps:$4 sm:$0xff]   ;;  %v3528_v33 = vld [vmem:[#allocation2 + $0x10c] ss:$16 sps:$4 sm:$0xff]   ;;  %v3530_v34 = vld [vmem:[#allocation2 + $0x100] ss:$16 sps:$4 sm:$0xff]  }
  0x42   :  { %v3531_v35 = vld [vmem:[#allocation2 + $0x108] ss:$16 sps:$4 sm:$0xff]   ;;  %v3532_v36 = vld [vmem:[#allocation2 + $0x124] ss:$16 sps:$4 sm:$0xff]   ;;  %v3534_v37 = vld [vmem:[#allocation2 + $0x12c] ss:$16 sps:$4 sm:$0xff]  }
  0x43   :  { %v3536_v38 = vld [vmem:[#allocation2 + $0x120] ss:$16 sps:$4 sm:$0xff]   ;;  %v3537_v39 = vld [vmem:[#allocation2 + $0x128] ss:$16 sps:$4 sm:$0xff]   ;;  %v3538_v40 = vld [vmem:[#allocation2 + $0x144] ss:$16 sps:$4 sm:$0xff]  }
  0x44   :  { %1322 = vmatpush1.bf16.msra.mxu0 %v3500_v14  ;;  %1494 = vmatpush1.bf16.msra.mxu1 %v3501_v15  ;;  %v3540_v41 = vld [vmem:[#allocation2 + $0x14c] ss:$16 sps:$4 sm:$0xff]   ;;  %v3542_v42 = vld [vmem:[#allocation2 + $0x140] ss:$16 sps:$4 sm:$0xff]   ;;  %v3543_v43 = vld [vmem:[#allocation2 + $0x148] ss:$16 sps:$4 sm:$0xff]  }
  0x45   :  { %1323 = vmatprep.subr.bf16.mxu0 %v3502_v16  ;;  %1495 = vmatprep.subr.bf16.mxu1 %v3504_v17  ;;  %v3544_v44 = vld [vmem:[#allocation2 + $0x164] ss:$16 sps:$4 sm:$0xff]   ;;  %v3546_v45 = vld [vmem:[#allocation2 + $0x16c] ss:$16 sps:$4 sm:$0xff]   ;;  %v3548_v48 = vld [vmem:[#allocation2 + $0x160] ss:$16 sps:$4 sm:$0xff]  }
  0x46   :  { %v69_v46 = vld [vmem:[%s4243_s0 + $0x8] sm:$0xff]  ;;  %v76_v47 = vld [vmem:[%s4243_s0 + $0x40] sm:$0xff]  ;;  %v75_v5 = vld [vmem:[%s4243_s0 + $0x38] sm:$0xff]  ;;  %vm1311_vm0 = vcmask 261120  }
  0x47   :  { %v3549_v49 = vld [vmem:[#allocation2 + $0x168] ss:$16 sps:$4 sm:$0xff]   ;;  %v83_v50 = vpack.c.bf16 %v76_v47, %v69_v46  ;;  %v3550_v51 = vld [vmem:[#allocation2 + $0x184] ss:$16 sps:$4 sm:$0xff]   ;;  %v3552_v52 = vld [vmem:[#allocation2 + $0x18c] ss:$16 sps:$4 sm:$0xff]  }
  0x48   :  { %1324 = vmatpush1.bf16.msra.mxu0 %v3506_v18  ;;  %1496 = vmatpush1.bf16.msra.mxu1 %v3507_v19  ;;  %v3554_v53 = vld [vmem:[#allocation2 + $0x180] ss:$16 sps:$4 sm:$0xff]   ;;  %v3555_v54 = vld [vmem:[#allocation2 + $0x188] ss:$16 sps:$4 sm:$0xff]   ;;  %v3556_v55 = vld [vmem:[#allocation2 + $0x1a4] ss:$16 sps:$4 sm:$0xff]  }
  0x49   :  { %1325 = vmatprep.subr.bf16.mxu0 %v3508_v20  ;;  %1497 = vmatprep.subr.bf16.mxu1 %v3510_v21  ;;  %v3558_v56 = vld [vmem:[#allocation2 + $0x1ac] ss:$16 sps:$4 sm:$0xff]   ;;  %v3560_v57 = vld [vmem:[#allocation2 + $0x1a0] ss:$16 sps:$4 sm:$0xff]   ;;  %v3561_v58 = vld [vmem:[#allocation2 + $0x1a8] ss:$16 sps:$4 sm:$0xff]  }
  0x4a   :  { %1347 = vmatprep.mubr.bf16.mxu0 %v83_v50  ;;  %1519 = vmatprep.mubr.bf16.mxu1 %v83_v50  ;;  %v3562_v59 = vld [vmem:[#allocation2 + $0x1c4] ss:$16 sps:$4 sm:$0xff]   ;;  %v3564_v60 = vld [vmem:[#allocation2 + $0x1cc] ss:$16 sps:$4 sm:$0xff]   ;;  %v3566_v61 = vld [vmem:[#allocation2 + $0x1c0] ss:$16 sps:$4 sm:$0xff]  }
  0x4b   :  { %v3567_v62 = vld [vmem:[#allocation2 + $0x1c8] ss:$16 sps:$4 sm:$0xff]   ;;  %v3568_v63 = vld [vmem:[#allocation2 + $0x1e4] ss:$16 sps:$4 sm:$0xff]   ;;  %v3570_v0 = vld [vmem:[#allocation2 + $0x1ec] ss:$16 sps:$4 sm:$0xff]  }
  0x4c   :  { %1326 = vmatpush1.bf16.msra.mxu0 %v3512_v22  ;;  %1498 = vmatpush1.bf16.msra.mxu1 %v3513_v23  ;;  %v3572_v1 = vld [vmem:[#allocation2 + $0x1e0] ss:$16 sps:$4 sm:$0xff]   ;;  %v3573_v2 = vld [vmem:[#allocation2 + $0x1e8] ss:$16 sps:$4 sm:$0xff]   ;;  %v3576_v3 = vld [vmem:[#allocation2 + $0x204] ss:$16 sps:$4 sm:$0xff]  }
  0x4d   :  { %1327 = vmatprep.subr.bf16.mxu0 %v3514_v24  ;;  %1499 = vmatprep.subr.bf16.mxu1 %v3516_v25  ;;  %v68_v4 = vld [vmem:[%s4243_s0] sm:$0xff]  ;;  %v3579_v6 = vld [vmem:[#allocation2 + $0x20c] ss:$16 sps:$4 sm:$0xff]   ;;  %v3577_v8 = vld [vmem:[#allocation2 + $0x208] ss:$16 sps:$4 sm:$0xff]  }
  0x4e   :  { %v3574_v7 = vld [vmem:[#allocation2 + $0x200] ss:$16 sps:$4 sm:$0xff]   ;;  %v82_v9 = vpack.c.bf16 %v75_v5, %v68_v4  ;;  %v3582_v10 = vld [vmem:[#allocation2 + $0x224] ss:$16 sps:$4 sm:$0xff]   ;;  %v3585_v11 = vld [vmem:[#allocation2 + $0x22c] ss:$16 sps:$4 sm:$0xff]  }
  0x4f   :  { %v3580_v12 = vld [vmem:[#allocation2 + $0x220] ss:$16 sps:$4 sm:$0xff]   ;;  %v3583_v13 = vld [vmem:[#allocation2 + $0x228] ss:$16 sps:$4 sm:$0xff]   ;;  %v3588_v14 = vld [vmem:[#allocation2 + $0x244] ss:$16 sps:$4 sm:$0xff]  }
  0x50   :  { %1328 = vmatpush1.bf16.msra.mxu0 %v3518_v26  ;;  %1500 = vmatpush1.bf16.msra.mxu1 %v3519_v27  ;;  %v3591_v15 = vld [vmem:[#allocation2 + $0x24c] ss:$16 sps:$4 sm:$0xff]   ;;  %v3586_v16 = vld [vmem:[#allocation2 + $0x240] ss:$16 sps:$4 sm:$0xff]   ;;  %v3589_v17 = vld [vmem:[#allocation2 + $0x248] ss:$16 sps:$4 sm:$0xff]  }
  0x51   :  { %1329 = vmatprep.subr.bf16.mxu0 %v3520_v28  ;;  %1501 = vmatprep.subr.bf16.mxu1 %v3522_v29  ;;  %v3594_v18 = vld [vmem:[#allocation2 + $0x264] ss:$16 sps:$4 sm:$0xff]   ;;  %v3597_v19 = vld [vmem:[#allocation2 + $0x26c] ss:$16 sps:$4 sm:$0xff]   ;;  %v3592_v20 = vld [vmem:[#allocation2 + $0x260] ss:$16 sps:$4 sm:$0xff]  }
  0x52   :  { %v3595_v21 = vld [vmem:[#allocation2 + $0x268] ss:$16 sps:$4 sm:$0xff]   ;;  %v3600_v22 = vld [vmem:[#allocation2 + $0x284] ss:$16 sps:$4 sm:$0xff]   ;;  %v3603_v23 = vld [vmem:[#allocation2 + $0x28c] ss:$16 sps:$4 sm:$0xff]  }
  0x53   :  { %v3598_v24 = vld [vmem:[#allocation2 + $0x280] ss:$16 sps:$4 sm:$0xff]   ;;  %v3601_v25 = vld [vmem:[#allocation2 + $0x288] ss:$16 sps:$4 sm:$0xff]   ;;  %v3606_v26 = vld [vmem:[#allocation2 + $0x2a4] ss:$16 sps:$4 sm:$0xff]  }
  0x54   :  { %1330 = vmatpush1.bf16.msra.mxu0 %v3524_v30  ;;  %1502 = vmatpush1.bf16.msra.mxu1 %v3525_v31  ;;  %v3609_v27 = vld [vmem:[#allocation2 + $0x2ac] ss:$16 sps:$4 sm:$0xff]   ;;  %v3604_v28 = vld [vmem:[#allocation2 + $0x2a0] ss:$16 sps:$4 sm:$0xff]   ;;  %v3607_v29 = vld [vmem:[#allocation2 + $0x2a8] ss:$16 sps:$4 sm:$0xff]  }
  0x55   :  { %1331 = vmatprep.subr.bf16.mxu0 %v3526_v32  ;;  %1503 = vmatprep.subr.bf16.mxu1 %v3528_v33  ;;  %v3612_v30 = vld [vmem:[#allocation2 + $0x2c4] ss:$16 sps:$4 sm:$0xff]   ;;  %v3615_v31 = vld [vmem:[#allocation2 + $0x2cc] ss:$16 sps:$4 sm:$0xff]   ;;  %v3628_v47 = vld [vmem:[#allocation2 + $0x320] ss:$16 sps:$4 sm:$0xff]  }
  0x56   :  { %v71_v32 = vld [vmem:[%s4243_s0 + $0x18] sm:$0xff]  ;;  %v78_v33 = vld [vmem:[%s4243_s0 + $0x50] sm:$0xff] }
  0x57   :  { %v3633_v46 = vld [vmem:[#allocation2 + $0x32c] ss:$16 sps:$4 sm:$0xff]   ;;  %v3661_v4 = vld [vmem:[#allocation2 + $0x3c8] ss:$16 sps:$4 sm:$0xff]   ;;  %v3666_v5 = vld [vmem:[#allocation2 + $0x3e4] ss:$16 sps:$4 sm:$0xff]  }
  0x58   :  { %1332 = vmatpush1.bf16.msra.mxu0 %v3530_v34  ;;  %1504 = vmatpush1.bf16.msra.mxu1 %v3531_v35  ;;  %v3610_v34 = vld [vmem:[#allocation2 + $0x2c0] ss:$16 sps:$4 sm:$0xff]   ;;  %v3613_v35 = vld [vmem:[#allocation2 + $0x2c8] ss:$16 sps:$4 sm:$0xff]   ;;  %v3639_v50 = vld [vmem:[#allocation2 + $0x34c] ss:$16 sps:$4 sm:$0xff]  }
  0x59   :  { %1333 = vmatprep.subr.bf16.mxu0 %v3532_v36  ;;  %1505 = vmatprep.subr.bf16.mxu1 %v3534_v37  ;;  %v85_v36 = vpack.c.bf16 %v78_v33, %v71_v32  ;;  %v3618_v37 = vld [vmem:[#allocation2 + $0x2e4] ss:$16 sps:$4 sm:$0xff]   ;;  %v3699_v32 = vld [vmem:[#allocation2 + $0x48c] ss:$16 sps:$4 sm:$0xff]   ;;  %v3694_v33 = vld [vmem:[#allocation2 + $0x480] ss:$16 sps:$4 sm:$0xff]  }
  0x5c   :  { %1334 = vmatpush1.bf16.msra.mxu0 %v3536_v38  ;;  %1506 = vmatpush1.bf16.msra.mxu1 %v3537_v39  ;;  %v3621_v38 = vld [vmem:[#allocation2 + $0x2ec] ss:$16 sps:$4 sm:$0xff]   ;;  %v3616_v39 = vld [vmem:[#allocation2 + $0x2e0] ss:$16 sps:$4 sm:$0xff]  }
  0x5d   :  { %1335 = vmatprep.subr.bf16.mxu0 %v3538_v40  ;;  %1507 = vmatprep.subr.bf16.mxu1 %v3540_v41  ;;  %v3619_v40 = vld [vmem:[#allocation2 + $0x2e8] ss:$16 sps:$4 sm:$0xff]   ;;  %v3624_v41 = vld [vmem:[#allocation2 + $0x304] ss:$16 sps:$4 sm:$0xff]  }
  0x60   :  { %1336 = vmatpush1.bf16.msra.mxu0 %v3542_v42  ;;  %1508 = vmatpush1.bf16.msra.mxu1 %v3543_v43  ;;  %v3627_v42 = vld [vmem:[#allocation2 + $0x30c] ss:$16 sps:$4 sm:$0xff]   ;;  %v3622_v43 = vld [vmem:[#allocation2 + $0x300] ss:$16 sps:$4 sm:$0xff]  }
  0x61   :  { %1337 = vmatprep.subr.bf16.mxu0 %v3544_v44  ;;  %1509 = vmatprep.subr.bf16.mxu1 %v3546_v45  ;;  %v3625_v44 = vld [vmem:[#allocation2 + $0x308] ss:$16 sps:$4 sm:$0xff]   ;;  %v3630_v45 = vld [vmem:[#allocation2 + $0x324] ss:$16 sps:$4 sm:$0xff]  }
  0x64   :  { %1338 = vmatpush1.bf16.msra.mxu0 %v3548_v48  ;;  %1510 = vmatpush1.bf16.msra.mxu1 %v3549_v49  ;;  %v3631_v48 = vld [vmem:[#allocation2 + $0x328] ss:$16 sps:$4 sm:$0xff]   ;;  %v3636_v49 = vld [vmem:[#allocation2 + $0x344] ss:$16 sps:$4 sm:$0xff]  }
  0x65   :  { %1339 = vmatprep.subr.bf16.mxu0 %v3550_v51  ;;  %1511 = vmatprep.subr.bf16.mxu1 %v3552_v52  ;;  %v3634_v51 = vld [vmem:[#allocation2 + $0x340] ss:$16 sps:$4 sm:$0xff]   ;;  %v3637_v52 = vld [vmem:[#allocation2 + $0x348] ss:$16 sps:$4 sm:$0xff]  }
  0x68   :  { %1340 = vmatpush1.bf16.msra.mxu0 %v3554_v53  ;;  %1512 = vmatpush1.bf16.msra.mxu1 %v3555_v54  ;;  %v3642_v53 = vld [vmem:[#allocation2 + $0x364] ss:$16 sps:$4 sm:$0xff]   ;;  %v3645_v54 = vld [vmem:[#allocation2 + $0x36c] ss:$16 sps:$4 sm:$0xff]  }
  0x69   :  { %1341 = vmatprep.subr.bf16.mxu0 %v3556_v55  ;;  %1513 = vmatprep.subr.bf16.mxu1 %v3558_v56  ;;  %v3640_v55 = vld [vmem:[#allocation2 + $0x360] ss:$16 sps:$4 sm:$0xff]   ;;  %v3643_v56 = vld [vmem:[#allocation2 + $0x368] ss:$16 sps:$4 sm:$0xff]  }
  0x6c   :  { %1342 = vmatpush1.bf16.msra.mxu0 %v3560_v57  ;;  %1514 = vmatpush1.bf16.msra.mxu1 %v3561_v58  ;;  %v3648_v57 = vld [vmem:[#allocation2 + $0x384] ss:$16 sps:$4 sm:$0xff]   ;;  %v3651_v58 = vld [vmem:[#allocation2 + $0x38c] ss:$16 sps:$4 sm:$0xff]  }
  0x6d   :  { %1343 = vmatprep.subr.bf16.mxu0 %v3562_v59  ;;  %1515 = vmatprep.subr.bf16.mxu1 %v3564_v60  ;;  %v3646_v59 = vld [vmem:[#allocation2 + $0x380] ss:$16 sps:$4 sm:$0xff]   ;;  %v3649_v60 = vld [vmem:[#allocation2 + $0x388] ss:$16 sps:$4 sm:$0xff]  }
  0x70   :  { %1344 = vmatpush1.bf16.msra.mxu0 %v3566_v61  ;;  %1516 = vmatpush1.bf16.msra.mxu1 %v3567_v62  ;;  %v3654_v61 = vld [vmem:[#allocation2 + $0x3a4] ss:$16 sps:$4 sm:$0xff]   ;;  %v3657_v62 = vld [vmem:[#allocation2 + $0x3ac] ss:$16 sps:$4 sm:$0xff]  }
  0x71   :  { %1345 = vmatprep.subr.bf16.mxu0 %v3568_v63  ;;  %1517 = vmatprep.subr.bf16.mxu1 %v3570_v0  ;;  %v3652_v63 = vld [vmem:[#allocation2 + $0x3a0] ss:$16 sps:$4 sm:$0xff]   ;;  %v3655_v0 = vld [vmem:[#allocation2 + $0x3a8] ss:$16 sps:$4 sm:$0xff]  }
  0x74   :  { %1346 = vmatpush1.bf16.msra.mxu0 %v3572_v1  ;;  %1518 = vmatpush1.bf16.msra.mxu1 %v3573_v2  ;;  %v3660_v1 = vld [vmem:[#allocation2 + $0x3c4] ss:$16 sps:$4 sm:$0xff]   ;;  %v3663_v2 = vld [vmem:[#allocation2 + $0x3cc] ss:$16 sps:$4 sm:$0xff]  }
  0x75   :  { %1358 = vmatprep.subr.bf16.mxu0 %v3576_v3  ;;  %1530 = vmatprep.subr.bf16.mxu1 %v3579_v6  ;;  %v3658_v3 = vld [vmem:[#allocation2 + $0x3c0] ss:$16 sps:$4 sm:$0xff]   ;;  %v3669_v6 = vld [vmem:[#allocation2 + $0x3ec] ss:$16 sps:$4 sm:$0xff]  }
  0x77   :  { %1348 = vmatmul.mubr.bf16.vlgmr.msra.gmra.mrb[0].mxu0 %v82_v9  ;;  %1520 = vmatmul.mubr.bf16.vlgmr.msra.gmra.mrb[0].mxu1 %v82_v9  ;;  %v3672_v9 = vld [vmem:[#allocation2 + $0x404] ss:$16 sps:$4 sm:$0xff]  }
  0x78   :  { %1359 = vmatpush1.bf16.msra.mxu0 %v3574_v7  ;;  %1531 = vmatpush1.bf16.msra.mxu1 %v3577_v8  ;;  %v3664_v7 = vld [vmem:[#allocation2 + $0x3e0] ss:$16 sps:$4 sm:$0xff]   ;;  %v3667_v8 = vld [vmem:[#allocation2 + $0x3e8] ss:$16 sps:$4 sm:$0xff]  }
  0x79   :  { %1360 = vmatprep.subr.bf16.mxu0 %v3582_v10  ;;  %1532 = vmatprep.subr.bf16.mxu1 %v3585_v11  ;;  %v70_v10 = vld [vmem:[%s4243_s0 + $0x10] sm:$0xff]  ;;  %v77_v11 = vld [vmem:[%s4243_s0 + $0x48] sm:$0xff] }
  0x7a   :  { %1390 = vmatprep.mubr.bf16.mxu0 %v85_v36  ;;  %1562 = vmatprep.mubr.bf16.mxu1 %v85_v36  ;;  %v3705_v36 = vld [vmem:[#allocation2 + $0x4ac] ss:$16 sps:$4 sm:$0xff]  }
  0x7c   :  { %1361 = vmatpush1.bf16.msra.mxu0 %v3580_v12  ;;  %1533 = vmatpush1.bf16.msra.mxu1 %v3583_v13  ;;  %v3675_v12 = vld [vmem:[#allocation2 + $0x40c] ss:$16 sps:$4 sm:$0xff]   ;;  %v3670_v13 = vld [vmem:[#allocation2 + $0x400] ss:$16 sps:$4 sm:$0xff]  }
  0x7d   :  { %1362 = vmatprep.subr.bf16.mxu0 %v3588_v14  ;;  %1534 = vmatprep.subr.bf16.mxu1 %v3591_v15  ;;  %v3673_v14 = vld [vmem:[#allocation2 + $0x408] ss:$16 sps:$4 sm:$0xff]   ;;  %v84_v15 = vpack.c.bf16 %v77_v11, %v70_v10  ;;  %v3762_v11 = vld [vmem:[#allocation2 + $0x5e4] ss:$16 sps:$4 sm:$0xff]  }
  0x7e   :  { %v3757_v10 = vld [vmem:[#allocation2 + $0x5c8] ss:$16 sps:$4 sm:$0xff]  }
  0x80   :  { %1363 = vmatpush1.bf16.msra.mxu0 %v3586_v16  ;;  %1535 = vmatpush1.bf16.msra.mxu1 %v3589_v17  ;;  %v3678_v16 = vld [vmem:[#allocation2 + $0x424] ss:$16 sps:$4 sm:$0xff]   ;;  %v3681_v17 = vld [vmem:[#allocation2 + $0x42c] ss:$16 sps:$4 sm:$0xff]  }
  0x81   :  { %1364 = vmatprep.subr.bf16.mxu0 %v3594_v18  ;;  %1536 = vmatprep.subr.bf16.mxu1 %v3597_v19  ;;  %v73_v18 = vld [vmem:[%s4243_s0 + $0x28] sm:$0xff]  ;;  %v3676_v19 = vld [vmem:[#allocation2 + $0x420] ss:$16 sps:$4 sm:$0xff]  }
  0x84   :  { %1365 = vmatpush1.bf16.msra.mxu0 %v3592_v20  ;;  %1537 = vmatpush1.bf16.msra.mxu1 %v3595_v21  ;;  %v3679_v20 = vld [vmem:[#allocation2 + $0x428] ss:$16 sps:$4 sm:$0xff]   ;;  %v80_v21 = vld [vmem:[%s4243_s0 + $0x60] sm:$0xff] }
  0x85   :  { %1366 = vmatprep.subr.bf16.mxu0 %v3600_v22  ;;  %1538 = vmatprep.subr.bf16.mxu1 %v3603_v23  ;;  %v3684_v22 = vld [vmem:[#allocation2 + $0x444] ss:$16 sps:$4 sm:$0xff]   ;;  %v87_v23 = vpack.c.bf16 %v80_v21, %v73_v18  ;;  %v3771_v18 = vld [vmem:[#allocation2 + $0x60c] ss:$16 sps:$4 sm:$0xff]  }
  0x88   :  { %1367 = vmatpush1.bf16.msra.mxu0 %v3598_v24  ;;  %1539 = vmatpush1.bf16.msra.mxu1 %v3601_v25  ;;  %v3687_v24 = vld [vmem:[#allocation2 + $0x44c] ss:$16 sps:$4 sm:$0xff]   ;;  %v3682_v25 = vld [vmem:[#allocation2 + $0x440] ss:$16 sps:$4 sm:$0xff]  }
  0x89   :  { %1368 = vmatprep.subr.bf16.mxu0 %v3606_v26  ;;  %1540 = vmatprep.subr.bf16.mxu1 %v3609_v27  ;;  %v3685_v26 = vld [vmem:[#allocation2 + $0x448] ss:$16 sps:$4 sm:$0xff]   ;;  %v3690_v27 = vld [vmem:[#allocation2 + $0x464] ss:$16 sps:$4 sm:$0xff]  }
  0x8c   :  { %1369 = vmatpush1.bf16.msra.mxu0 %v3604_v28  ;;  %1541 = vmatpush1.bf16.msra.mxu1 %v3607_v29  ;;  %v3693_v28 = vld [vmem:[#allocation2 + $0x46c] ss:$16 sps:$4 sm:$0xff]   ;;  %v3688_v29 = vld [vmem:[#allocation2 + $0x460] ss:$16 sps:$4 sm:$0xff]  }
  0x8d   :  { %1370 = vmatprep.subr.bf16.mxu0 %v3612_v30  ;;  %1542 = vmatprep.subr.bf16.mxu1 %v3615_v31  ;;  %v3691_v30 = vld [vmem:[#allocation2 + $0x468] ss:$16 sps:$4 sm:$0xff]   ;;  %v3696_v31 = vld [vmem:[#allocation2 + $0x484] ss:$16 sps:$4 sm:$0xff]  }
  0x90   :  { %1371 = vmatpush1.bf16.msra.mxu0 %v3610_v34  ;;  %1543 = vmatpush1.bf16.msra.mxu1 %v3613_v35  ;;  %v3697_v34 = vld [vmem:[#allocation2 + $0x488] ss:$16 sps:$4 sm:$0xff]   ;;  %v3702_v35 = vld [vmem:[#allocation2 + $0x4a4] ss:$16 sps:$4 sm:$0xff]  }
  0x91   :  { %1372 = vmatprep.subr.bf16.mxu0 %v3618_v37  ;;  %1544 = vmatprep.subr.bf16.mxu1 %v3621_v38  ;;  %v3700_v37 = vld [vmem:[#allocation2 + $0x4a0] ss:$16 sps:$4 sm:$0xff]   ;;  %v3703_v38 = vld [vmem:[#allocation2 + $0x4a8] ss:$16 sps:$4 sm:$0xff]  }
  0x94   :  { %1373 = vmatpush1.bf16.msra.mxu0 %v3616_v39  ;;  %1545 = vmatpush1.bf16.msra.mxu1 %v3619_v40  ;;  %v3708_v39 = vld [vmem:[#allocation2 + $0x4c4] ss:$16 sps:$4 sm:$0xff]   ;;  %v3711_v40 = vld [vmem:[#allocation2 + $0x4cc] ss:$16 sps:$4 sm:$0xff]  }
  0x95   :  { %1374 = vmatprep.subr.bf16.mxu0 %v3624_v41  ;;  %1546 = vmatprep.subr.bf16.mxu1 %v3627_v42  ;;  %v3706_v41 = vld [vmem:[#allocation2 + $0x4c0] ss:$16 sps:$4 sm:$0xff]   ;;  %v3709_v42 = vld [vmem:[#allocation2 + $0x4c8] ss:$16 sps:$4 sm:$0xff]  }
  0x98   :  { %1375 = vmatpush1.bf16.msra.mxu0 %v3622_v43  ;;  %1547 = vmatpush1.bf16.msra.mxu1 %v3625_v44  ;;  %v3714_v43 = vld [vmem:[#allocation2 + $0x4e4] ss:$16 sps:$4 sm:$0xff]   ;;  %v3717_v44 = vld [vmem:[#allocation2 + $0x4ec] ss:$16 sps:$4 sm:$0xff]  }
  0x99   :  { %1376 = vmatprep.subr.bf16.mxu0 %v3630_v45  ;;  %1548 = vmatprep.subr.bf16.mxu1 %v3633_v46  ;;  %v3712_v45 = vld [vmem:[#allocation2 + $0x4e0] ss:$16 sps:$4 sm:$0xff]   ;;  %v3715_v46 = vld [vmem:[#allocation2 + $0x4e8] ss:$16 sps:$4 sm:$0xff]  }
  0x9c   :  { %1377 = vmatpush1.bf16.msra.mxu0 %v3628_v47  ;;  %1549 = vmatpush1.bf16.msra.mxu1 %v3631_v48  ;;  %v3720_v47 = vld [vmem:[#allocation2 + $0x504] ss:$16 sps:$4 sm:$0xff]   ;;  %v3723_v48 = vld [vmem:[#allocation2 + $0x50c] ss:$16 sps:$4 sm:$0xff]  }
  0x9d   :  { %1378 = vmatprep.subr.bf16.mxu0 %v3636_v49  ;;  %1550 = vmatprep.subr.bf16.mxu1 %v3639_v50  ;;  %v3718_v49 = vld [vmem:[#allocation2 + $0x500] ss:$16 sps:$4 sm:$0xff]   ;;  %v3721_v50 = vld [vmem:[#allocation2 + $0x508] ss:$16 sps:$4 sm:$0xff]  }
  0xa0   :  { %1379 = vmatpush1.bf16.msra.mxu0 %v3634_v51  ;;  %1551 = vmatpush1.bf16.msra.mxu1 %v3637_v52  ;;  %v3726_v51 = vld [vmem:[#allocation2 + $0x524] ss:$16 sps:$4 sm:$0xff]   ;;  %v3729_v52 = vld [vmem:[#allocation2 + $0x52c] ss:$16 sps:$4 sm:$0xff]  }
  0xa1   :  { %1380 = vmatprep.subr.bf16.mxu0 %v3642_v53  ;;  %1552 = vmatprep.subr.bf16.mxu1 %v3645_v54  ;;  %v3724_v53 = vld [vmem:[#allocation2 + $0x520] ss:$16 sps:$4 sm:$0xff]   ;;  %v3727_v54 = vld [vmem:[#allocation2 + $0x528] ss:$16 sps:$4 sm:$0xff]  }
  0xa4   :  { %1381 = vmatpush1.bf16.msra.mxu0 %v3640_v55  ;;  %1553 = vmatpush1.bf16.msra.mxu1 %v3643_v56  ;;  %v3732_v55 = vld [vmem:[#allocation2 + $0x544] ss:$16 sps:$4 sm:$0xff]   ;;  %v3735_v56 = vld [vmem:[#allocation2 + $0x54c] ss:$16 sps:$4 sm:$0xff]  }
  0xa5   :  { %1382 = vmatprep.subr.bf16.mxu0 %v3648_v57  ;;  %1554 = vmatprep.subr.bf16.mxu1 %v3651_v58  ;;  %v3730_v57 = vld [vmem:[#allocation2 + $0x540] ss:$16 sps:$4 sm:$0xff]   ;;  %v3733_v58 = vld [vmem:[#allocation2 + $0x548] ss:$16 sps:$4 sm:$0xff]  }
  0xa8   :  { %1383 = vmatpush1.bf16.msra.mxu0 %v3646_v59  ;;  %1555 = vmatpush1.bf16.msra.mxu1 %v3649_v60  ;;  %v3738_v59 = vld [vmem:[#allocation2 + $0x564] ss:$16 sps:$4 sm:$0xff]   ;;  %v3741_v60 = vld [vmem:[#allocation2 + $0x56c] ss:$16 sps:$4 sm:$0xff]  }
  0xa9   :  { %1384 = vmatprep.subr.bf16.mxu0 %v3654_v61  ;;  %1556 = vmatprep.subr.bf16.mxu1 %v3657_v62  ;;  %v3736_v61 = vld [vmem:[#allocation2 + $0x560] ss:$16 sps:$4 sm:$0xff]   ;;  %v3739_v62 = vld [vmem:[#allocation2 + $0x568] ss:$16 sps:$4 sm:$0xff]  }
  0xac   :  { %1385 = vmatpush1.bf16.msra.mxu0 %v3652_v63  ;;  %1557 = vmatpush1.bf16.msra.mxu1 %v3655_v0  ;;  %v3744_v63 = vld [vmem:[#allocation2 + $0x584] ss:$16 sps:$4 sm:$0xff]   ;;  %v3747_v0 = vld [vmem:[#allocation2 + $0x58c] ss:$16 sps:$4 sm:$0xff]  }
  0xad   :  { %1386 = vmatprep.subr.bf16.mxu0 %v3660_v1  ;;  %1558 = vmatprep.subr.bf16.mxu1 %v3663_v2  ;;  %v3742_v1 = vld [vmem:[#allocation2 + $0x580] ss:$16 sps:$4 sm:$0xff]   ;;  %v3745_v2 = vld [vmem:[#allocation2 + $0x588] ss:$16 sps:$4 sm:$0xff]  }
  0xb0   :  { %1387 = vmatpush1.bf16.msra.mxu0 %v3658_v3  ;;  %1559 = vmatpush1.bf16.msra.mxu1 %v3661_v4  ;;  %v3750_v3 = vld [vmem:[#allocation2 + $0x5a4] ss:$16 sps:$4 sm:$0xff]   ;;  %v3753_v4 = vld [vmem:[#allocation2 + $0x5ac] ss:$16 sps:$4 sm:$0xff]  }
  0xb1   :  { %1388 = vmatprep.subr.bf16.mxu0 %v3666_v5  ;;  %1560 = vmatprep.subr.bf16.mxu1 %v3669_v6  ;;  %v3748_v5 = vld [vmem:[#allocation2 + $0x5a0] ss:$16 sps:$4 sm:$0xff]   ;;  %v3751_v6 = vld [vmem:[#allocation2 + $0x5a8] ss:$16 sps:$4 sm:$0xff]  }
  0xb4   :  { %1389 = vmatpush1.bf16.msra.mxu0 %v3664_v7  ;;  %1561 = vmatpush1.bf16.msra.mxu1 %v3667_v8  ;;  %v3756_v7 = vld [vmem:[#allocation2 + $0x5c4] ss:$16 sps:$4 sm:$0xff]   ;;  %v3759_v8 = vld [vmem:[#allocation2 + $0x5cc] ss:$16 sps:$4 sm:$0xff]  }
  0xb5   :  { %1401 = vmatprep.subr.bf16.mxu0 %v3672_v9  ;;  %1573 = vmatprep.subr.bf16.mxu1 %v3675_v12  ;;  %v3754_v9 = vld [vmem:[#allocation2 + $0x5c0] ss:$16 sps:$4 sm:$0xff]   ;;  %v3765_v12 = vld [vmem:[#allocation2 + $0x5ec] ss:$16 sps:$4 sm:$0xff]  }
  0xb7   :  { %1391 = vmatmul.mubr.bf16.vlgmr.msra.gmra.mrb[0].mxu0 %v84_v15  ;;  %1563 = vmatmul.mubr.bf16.vlgmr.msra.gmra.mrb[0].mxu1 %v84_v15  ;;  %v72_v15 = vld [vmem:[%s4243_s0 + $0x20] sm:$0xff] }
  0xb8   :  { %1402 = vmatpush1.bf16.msra.mxu0 %v3670_v13  ;;  %1574 = vmatpush1.bf16.msra.mxu1 %v3673_v14  ;;  %v3760_v13 = vld [vmem:[#allocation2 + $0x5e0] ss:$16 sps:$4 sm:$0xff]   ;;  %v3763_v14 = vld [vmem:[#allocation2 + $0x5e8] ss:$16 sps:$4 sm:$0xff]  }
  0xb9   :  { %1403 = vmatprep.subr.bf16.mxu0 %v3678_v16  ;;  %1575 = vmatprep.subr.bf16.mxu1 %v3681_v17  ;;  %v79_v16 = vld [vmem:[%s4243_s0 + $0x58] sm:$0xff]  ;;  %v3768_v17 = vld [vmem:[#allocation2 + $0x604] ss:$16 sps:$4 sm:$0xff]  }
  0xba   :  { %1433 = vmatprep.mubr.bf16.mxu0 %v87_v23  ;;  %1605 = vmatprep.mubr.bf16.mxu1 %v87_v23  ;;  %v86_v21 = vpack.c.bf16 %v79_v16, %v72_v15  ;;  %v3777_v23 = vld [vmem:[#allocation2 + $0x62c] ss:$16 sps:$4 sm:$0xff]   ;;  %v3850_v16 = vld [vmem:[#allocation4 + $0x180] ss:$16 sps:$4 sm:$0xff]  }
  0xbb   :  { %v3855_v15 = vld [vmem:[#allocation4 + $0x18c] ss:$16 sps:$4 sm:$0xff]  }
  0xbc   :  { %1404 = vmatpush1.bf16.msra.mxu0 %v3676_v19  ;;  %1576 = vmatpush1.bf16.msra.mxu1 %v3679_v20  ;;  %v3766_v19 = vld [vmem:[#allocation2 + $0x600] ss:$16 sps:$4 sm:$0xff]   ;;  %v3769_v20 = vld [vmem:[#allocation2 + $0x608] ss:$16 sps:$4 sm:$0xff]  }
  0xbd   :  { %1405 = vmatprep.subr.bf16.mxu0 %v3684_v22  ;;  %1577 = vmatprep.subr.bf16.mxu1 %v3687_v24  ;;  %v3774_v22 = vld [vmem:[#allocation2 + $0x624] ss:$16 sps:$4 sm:$0xff]   ;;  %v3772_v24 = vld [vmem:[#allocation2 + $0x620] ss:$16 sps:$4 sm:$0xff]  }
  0xc0   :  { %1406 = vmatpush1.bf16.msra.mxu0 %v3682_v25  ;;  %1578 = vmatpush1.bf16.msra.mxu1 %v3685_v26  ;;  %v3775_v25 = vld [vmem:[#allocation2 + $0x628] ss:$16 sps:$4 sm:$0xff]   ;;  %v3780_v26 = vld [vmem:[#allocation4 + $0x4] ss:$16 sps:$4 sm:$0xff]  }
  0xc1   :  { %1407 = vmatprep.subr.bf16.mxu0 %v3690_v27  ;;  %1579 = vmatprep.subr.bf16.mxu1 %v3693_v28  ;;  %v3783_v27 = vld [vmem:[#allocation4 + $0xc] ss:$16 sps:$4 sm:$0xff]   ;;  %v4079_v28 = vmov 0  }
  0xc4   :  { %1408 = vmatpush1.bf16.msra.mxu0 %v3688_v29  ;;  %1580 = vmatpush1.bf16.msra.mxu1 %v3691_v30  ;;  %v74_v29 = vld [vmem:[%s4243_s0 + $0x30] sm:$0xff]  ;;  %v81_v30 = vld [vmem:[%s4243_s0 + $0x68] sm:$0xff] }
  0xc5   :  { %1409 = vmatprep.subr.bf16.mxu0 %v3696_v31  ;;  %1581 = vmatprep.subr.bf16.mxu1 %v3699_v32  ;;  %v3778_v31 = vld [vmem:[#allocation4] ss:$16 sps:$4 sm:$0xff]   ;;  %v3781_v32 = vld [vmem:[#allocation4 + $0x8] ss:$16 sps:$4 sm:$0xff]  }
  0xc8   :  { %1410 = vmatpush1.bf16.msra.mxu0 %v3694_v33  ;;  %1582 = vmatpush1.bf16.msra.mxu1 %v3697_v34  ;;  %v88_v33 = vpack.c.bf16 %v81_v30, %v74_v29  ;;  %v3786_v34 = vld [vmem:[#allocation4 + $0x24] ss:$16 sps:$4 sm:$0xff]   ;;  %v3871_v29 = vld [vmem:[#allocation4 + $0x1e8] ss:$16 sps:$4 sm:$0xff]  }
  0xc9   :  { %1411 = vmatprep.subr.bf16.mxu0 %v3702_v35  ;;  %1583 = vmatprep.subr.bf16.mxu1 %v3705_v36  ;;  %v3789_v35 = vld [vmem:[#allocation4 + $0x2c] ss:$16 sps:$4 sm:$0xff]   ;;  %v3784_v36 = vld [vmem:[#allocation4 + $0x20] ss:$16 sps:$4 sm:$0xff]   ;;  %v3876_v30 = vld [vmem:[#allocation4 + $0x204] ss:$16 sps:$4 sm:$0xff]  }
  0xcc   :  { %1412 = vmatpush1.bf16.msra.mxu0 %v3700_v37  ;;  %1584 = vmatpush1.bf16.msra.mxu1 %v3703_v38  ;;  %v3787_v37 = vld [vmem:[#allocation4 + $0x28] ss:$16 sps:$4 sm:$0xff]   ;;  %v3792_v38 = vld [vmem:[#allocation4 + $0x44] ss:$16 sps:$4 sm:$0xff]  }
  0xcd   :  { %1413 = vmatprep.subr.bf16.mxu0 %v3708_v39  ;;  %1585 = vmatprep.subr.bf16.mxu1 %v3711_v40  ;;  %v3795_v39 = vld [vmem:[#allocation4 + $0x4c] ss:$16 sps:$4 sm:$0xff]   ;;  %v3790_v40 = vld [vmem:[#allocation4 + $0x40] ss:$16 sps:$4 sm:$0xff]  }
  0xd0   :  { %1414 = vmatpush1.bf16.msra.mxu0 %v3706_v41  ;;  %1586 = vmatpush1.bf16.msra.mxu1 %v3709_v42  ;;  %v3793_v41 = vld [vmem:[#allocation4 + $0x48] ss:$16 sps:$4 sm:$0xff]   ;;  %v3798_v42 = vld [vmem:[#allocation4 + $0x64] ss:$16 sps:$4 sm:$0xff]  }
  0xd1   :  { %1415 = vmatprep.subr.bf16.mxu0 %v3714_v43  ;;  %1587 = vmatprep.subr.bf16.mxu1 %v3717_v44  ;;  %v3801_v43 = vld [vmem:[#allocation4 + $0x6c] ss:$16 sps:$4 sm:$0xff]   ;;  %v3796_v44 = vld [vmem:[#allocation4 + $0x60] ss:$16 sps:$4 sm:$0xff]  }
  0xd4   :  { %1416 = vmatpush1.bf16.msra.mxu0 %v3712_v45  ;;  %1588 = vmatpush1.bf16.msra.mxu1 %v3715_v46  ;;  %v3799_v45 = vld [vmem:[#allocation4 + $0x68] ss:$16 sps:$4 sm:$0xff]   ;;  %v3804_v46 = vld [vmem:[#allocation4 + $0x84] ss:$16 sps:$4 sm:$0xff]  }
  0xd5   :  { %1417 = vmatprep.subr.bf16.mxu0 %v3720_v47  ;;  %1589 = vmatprep.subr.bf16.mxu1 %v3723_v48  ;;  %v3807_v47 = vld [vmem:[#allocation4 + $0x8c] ss:$16 sps:$4 sm:$0xff]   ;;  %v3802_v48 = vld [vmem:[#allocation4 + $0x80] ss:$16 sps:$4 sm:$0xff]  }
  0xd8   :  { %1418 = vmatpush1.bf16.msra.mxu0 %v3718_v49  ;;  %1590 = vmatpush1.bf16.msra.mxu1 %v3721_v50  ;;  %v3805_v49 = vld [vmem:[#allocation4 + $0x88] ss:$16 sps:$4 sm:$0xff]   ;;  %v3810_v50 = vld [vmem:[#allocation4 + $0xa4] ss:$16 sps:$4 sm:$0xff]  }
  0xd9   :  { %1419 = vmatprep.subr.bf16.mxu0 %v3726_v51  ;;  %1591 = vmatprep.subr.bf16.mxu1 %v3729_v52  ;;  %v3813_v51 = vld [vmem:[#allocation4 + $0xac] ss:$16 sps:$4 sm:$0xff]   ;;  %v3808_v52 = vld [vmem:[#allocation4 + $0xa0] ss:$16 sps:$4 sm:$0xff]  }
  0xdc   :  { %1420 = vmatpush1.bf16.msra.mxu0 %v3724_v53  ;;  %1592 = vmatpush1.bf16.msra.mxu1 %v3727_v54  ;;  %v3811_v53 = vld [vmem:[#allocation4 + $0xa8] ss:$16 sps:$4 sm:$0xff]   ;;  %v3816_v54 = vld [vmem:[#allocation4 + $0xc4] ss:$16 sps:$4 sm:$0xff]  }
  0xdd   :  { %1421 = vmatprep.subr.bf16.mxu0 %v3732_v55  ;;  %1593 = vmatprep.subr.bf16.mxu1 %v3735_v56  ;;  %v3819_v55 = vld [vmem:[#allocation4 + $0xcc] ss:$16 sps:$4 sm:$0xff]   ;;  %v3814_v56 = vld [vmem:[#allocation4 + $0xc0] ss:$16 sps:$4 sm:$0xff]  }
  0xe0   :  { %1422 = vmatpush1.bf16.msra.mxu0 %v3730_v57  ;;  %1594 = vmatpush1.bf16.msra.mxu1 %v3733_v58  ;;  %v3817_v57 = vld [vmem:[#allocation4 + $0xc8] ss:$16 sps:$4 sm:$0xff]   ;;  %v3822_v58 = vld [vmem:[#allocation4 + $0xe4] ss:$16 sps:$4 sm:$0xff]  }
  0xe1   :  { %1423 = vmatprep.subr.bf16.mxu0 %v3738_v59  ;;  %1595 = vmatprep.subr.bf16.mxu1 %v3741_v60  ;;  %v3825_v59 = vld [vmem:[#allocation4 + $0xec] ss:$16 sps:$4 sm:$0xff]   ;;  %v3820_v60 = vld [vmem:[#allocation4 + $0xe0] ss:$16 sps:$4 sm:$0xff]  }
  0xe4   :  { %1424 = vmatpush1.bf16.msra.mxu0 %v3736_v61  ;;  %1596 = vmatpush1.bf16.msra.mxu1 %v3739_v62  ;;  %v3823_v61 = vld [vmem:[#allocation4 + $0xe8] ss:$16 sps:$4 sm:$0xff]   ;;  %v3828_v62 = vld [vmem:[#allocation4 + $0x104] ss:$16 sps:$4 sm:$0xff]  }
  0xe5   :  { %1425 = vmatprep.subr.bf16.mxu0 %v3744_v63  ;;  %1597 = vmatprep.subr.bf16.mxu1 %v3747_v0  ;;  %v3831_v63 = vld [vmem:[#allocation4 + $0x10c] ss:$16 sps:$4 sm:$0xff]   ;;  %v3826_v0 = vld [vmem:[#allocation4 + $0x100] ss:$16 sps:$4 sm:$0xff]  }
  0xe8   :  { %1426 = vmatpush1.bf16.msra.mxu0 %v3742_v1  ;;  %1598 = vmatpush1.bf16.msra.mxu1 %v3745_v2  ;;  %v3829_v1 = vld [vmem:[#allocation4 + $0x108] ss:$16 sps:$4 sm:$0xff]   ;;  %v3834_v2 = vld [vmem:[#allocation4 + $0x124] ss:$16 sps:$4 sm:$0xff]  }
  0xe9   :  { %1427 = vmatprep.subr.bf16.mxu0 %v3750_v3  ;;  %1599 = vmatprep.subr.bf16.mxu1 %v3753_v4  ;;  %v3837_v3 = vld [vmem:[#allocation4 + $0x12c] ss:$16 sps:$4 sm:$0xff]   ;;  %v3832_v4 = vld [vmem:[#allocation4 + $0x120] ss:$16 sps:$4 sm:$0xff]  }
  0xec   :  { %1428 = vmatpush1.bf16.msra.mxu0 %v3748_v5  ;;  %1600 = vmatpush1.bf16.msra.mxu1 %v3751_v6  ;;  %v3835_v5 = vld [vmem:[#allocation4 + $0x128] ss:$16 sps:$4 sm:$0xff]   ;;  %v3840_v6 = vld [vmem:[#allocation4 + $0x144] ss:$16 sps:$4 sm:$0xff]  }
  0xed   :  { %1429 = vmatprep.subr.bf16.mxu0 %v3756_v7  ;;  %1601 = vmatprep.subr.bf16.mxu1 %v3759_v8  ;;  %v3843_v7 = vld [vmem:[#allocation4 + $0x14c] ss:$16 sps:$4 sm:$0xff]   ;;  %v3838_v8 = vld [vmem:[#allocation4 + $0x140] ss:$16 sps:$4 sm:$0xff]  }
  0xf0   :  { %1430 = vmatpush1.bf16.msra.mxu0 %v3754_v9  ;;  %1602 = vmatpush1.bf16.msra.mxu1 %v3757_v10  ;;  %v3841_v9 = vld [vmem:[#allocation4 + $0x148] ss:$16 sps:$4 sm:$0xff]   ;;  %v3846_v10 = vld [vmem:[#allocation4 + $0x164] ss:$16 sps:$4 sm:$0xff]  }
  0xf1   :  { %1431 = vmatprep.subr.bf16.mxu0 %v3762_v11  ;;  %1603 = vmatprep.subr.bf16.mxu1 %v3765_v12  ;;  %v3849_v11 = vld [vmem:[#allocation4 + $0x16c] ss:$16 sps:$4 sm:$0xff]   ;;  %v3844_v12 = vld [vmem:[#allocation4 + $0x160] ss:$16 sps:$4 sm:$0xff]  }
  0xf4   :  { %1432 = vmatpush1.bf16.msra.mxu0 %v3760_v13  ;;  %1604 = vmatpush1.bf16.msra.mxu1 %v3763_v14  ;;  %v3847_v13 = vld [vmem:[#allocation4 + $0x168] ss:$16 sps:$4 sm:$0xff]   ;;  %v3852_v14 = vld [vmem:[#allocation4 + $0x184] ss:$16 sps:$4 sm:$0xff]  }
  0xf5   :  { %1444 = vmatprep.subr.bf16.mxu0 %v3768_v17  ;;  %1616 = vmatprep.subr.bf16.mxu1 %v3771_v18  ;;  %v3853_v17 = vld [vmem:[#allocation4 + $0x188] ss:$16 sps:$4 sm:$0xff]   ;;  %v3858_v18 = vld [vmem:[#allocation4 + $0x1a4] ss:$16 sps:$4 sm:$0xff]  }
  0xf7   :  { %1434 = vmatmul.mubr.bf16.vlgmr.msra.gmra.mrb[0].mxu0 %v86_v21  ;;  %1606 = vmatmul.mubr.bf16.vlgmr.msra.gmra.mrb[0].mxu1 %v86_v21  ;;  %v3859_v21 = vld [vmem:[#allocation4 + $0x1a8] ss:$16 sps:$4 sm:$0xff]  }
  0xf8   :  { %1445 = vmatpush1.bf16.msra.mxu0 %v3766_v19  ;;  %1617 = vmatpush1.bf16.msra.mxu1 %v3769_v20  ;;  %v3861_v19 = vld [vmem:[#allocation4 + $0x1ac] ss:$16 sps:$4 sm:$0xff]   ;;  %v3856_v20 = vld [vmem:[#allocation4 + $0x1a0] ss:$16 sps:$4 sm:$0xff]  }
  0xf9   :  { %1446 = vmatprep.subr.bf16.mxu0 %v3774_v22  ;;  %1618 = vmatprep.subr.bf16.mxu1 %v3777_v23  ;;  %v3864_v22 = vld [vmem:[#allocation4 + $0x1c4] ss:$16 sps:$4 sm:$0xff]   ;;  %v3867_v23 = vld [vmem:[#allocation4 + $0x1cc] ss:$16 sps:$4 sm:$0xff]  }
  0xfa   :  { %1476 = vmatprep.mubr.bf16.mxu0 %v4079_v28  ;;  %1648 = vmatprep.mubr.bf16.mxu1 %v4079_v28  ;;  %v3868_v28 = vld [vmem:[#allocation4 + $0x1e0] ss:$16 sps:$4 sm:$0xff]  }
  0xfc   :  { %1447 = vmatpush1.bf16.msra.mxu0 %v3772_v24  ;;  %1619 = vmatpush1.bf16.msra.mxu1 %v3775_v25  ;;  %v3862_v24 = vld [vmem:[#allocation4 + $0x1c0] ss:$16 sps:$4 sm:$0xff]   ;;  %v3865_v25 = vld [vmem:[#allocation4 + $0x1c8] ss:$16 sps:$4 sm:$0xff]  }
  0xfd   :  { %2461 = vmatprep.subr.bf16.mxu0 %v3780_v26  ;;  %2547 = vmatprep.subr.bf16.mxu1 %v3783_v27  ;;  %v3870_v26 = vld [vmem:[#allocation4 + $0x1e4] ss:$16 sps:$4 sm:$0xff]   ;;  %v3873_v27 = vld [vmem:[#allocation4 + $0x1ec] ss:$16 sps:$4 sm:$0xff]  }
 0x103   :  { %3206 = vmatmul.mubr.msk.bf16.vlgmr.msra.gmra.mrb[0].mxu0 %vm1311_vm0, %v88_v33  ;;  %3207 = vmatmul.mubr.msk.bf16.vlgmr.msra.gmra.mrb[0].mxu1 %vm1311_vm0, %v88_v33 }
 0x104   :  { %2462 = vmatpush1.bf16.msra.mxu0 %v3778_v31  ;;  %2548 = vmatpush1.bf16.msra.mxu1 %v3781_v32  ;;  %v3879_v31 = vld [vmem:[#allocation4 + $0x20c] ss:$16 sps:$4 sm:$0xff]   ;;  %v291_v32 = vlaneseq }
 0x105   :  { %2463 = vmatprep.subr.bf16.mxu0 %v3786_v34  ;;  %2549 = vmatprep.subr.bf16.mxu1 %v3789_v35 }
 0x106   :  { %v4205_v33 = vshrl.u32 %v291_v32, 7  ;;  %v3913_v32 = vld [vmem:[#allocation4 + $0x2c8] ss:$16 sps:$4 sm:$0xff]  }
 0x108   :  { %2464 = vmatpush1.bf16.msra.mxu0 %v3784_v36  ;;  %2550 = vmatpush1.bf16.msra.mxu1 %v3787_v37  ;;  %v293_v34 = vsub.s32 0, %v4205_v33  ;;  %v301_v35 = vsub.s32 2, %v4205_v33  ;;  %v289_v36 = vld [vmem:[%s4245_s2] sm:$0xf]  ;;  %v297_v37 = vsub.s32 1, %v4205_v33 }
 0x109   :  { %2465 = vmatprep.subr.bf16.mxu0 %v3792_v38  ;;  %2551 = vmatprep.subr.bf16.mxu1 %v3795_v39  ;;  %v305_v38 = vsub.s32 3, %v4205_v33 }
 0x10a   :  { %v294_v39 = vrot.slane %v289_v36, %v293_v34 }
 0x10c   :  { %2466 = vmatpush1.bf16.msra.mxu0 %v3790_v40  ;;  %2552 = vmatpush1.bf16.msra.mxu1 %v3793_v41  ;;  %v302_v40 = vrot.slane %v289_v36, %v301_v35  ;;  %v298_v41 = vrot.slane %v289_v36, %v297_v37 }
 0x10d   :  { %2467 = vmatprep.subr.bf16.mxu0 %v3798_v42  ;;  %2553 = vmatprep.subr.bf16.mxu1 %v3801_v43  ;;  %v306_v42 = vrot.slane %v289_v36, %v305_v38  ;;  %v3918_v36 = vld [vmem:[#allocation4 + $0x2e4] ss:$16 sps:$4 sm:$0xff]  }
 0x110   :  { %2468 = vmatpush1.bf16.msra.mxu0 %v3796_v44  ;;  %2554 = vmatpush1.bf16.msra.mxu1 %v3799_v45 }
 0x111   :  { %2469 = vmatprep.subr.bf16.mxu0 %v3804_v46  ;;  %2555 = vmatprep.subr.bf16.mxu1 %v3807_v47 }
 0x114   :  { %2470 = vmatpush1.bf16.msra.mxu0 %v3802_v48  ;;  %2556 = vmatpush1.bf16.msra.mxu1 %v3805_v49 }
 0x115   :  { %2471 = vmatprep.subr.bf16.mxu0 %v3810_v50  ;;  %2557 = vmatprep.subr.bf16.mxu1 %v3813_v51 }
 0x118   :  { %2472 = vmatpush1.bf16.msra.mxu0 %v3808_v52  ;;  %2558 = vmatpush1.bf16.msra.mxu1 %v3811_v53 }
 0x119   :  { %2473 = vmatprep.subr.bf16.mxu0 %v3816_v54  ;;  %2559 = vmatprep.subr.bf16.mxu1 %v3819_v55 }
 0x11c   :  { %2474 = vmatpush1.bf16.msra.mxu0 %v3814_v56  ;;  %2560 = vmatpush1.bf16.msra.mxu1 %v3817_v57 }
 0x11d   :  { %2475 = vmatprep.subr.bf16.mxu0 %v3822_v58  ;;  %2561 = vmatprep.subr.bf16.mxu1 %v3825_v59 }
 0x120   :  { %2476 = vmatpush1.bf16.msra.mxu0 %v3820_v60  ;;  %2562 = vmatpush1.bf16.msra.mxu1 %v3823_v61 }
 0x121   :  { %2477 = vmatprep.subr.bf16.mxu0 %v3828_v62  ;;  %2563 = vmatprep.subr.bf16.mxu1 %v3831_v63 }
 0x124   :  { %2478 = vmatpush1.bf16.msra.mxu0 %v3826_v0  ;;  %2564 = vmatpush1.bf16.msra.mxu1 %v3829_v1 }
 0x125   :  { %2479 = vmatprep.subr.bf16.mxu0 %v3834_v2  ;;  %2565 = vmatprep.subr.bf16.mxu1 %v3837_v3 }
 0x128   :  { %2480 = vmatpush1.bf16.msra.mxu0 %v3832_v4  ;;  %2566 = vmatpush1.bf16.msra.mxu1 %v3835_v5 }
 0x129   :  { %2481 = vmatprep.subr.bf16.mxu0 %v3840_v6  ;;  %2567 = vmatprep.subr.bf16.mxu1 %v3843_v7  ;;  %v3874_v7 = vld [vmem:[#allocation4 + $0x200] ss:$16 sps:$4 sm:$0xff]  }
 0x12c   :  { %2482 = vmatpush1.bf16.msra.mxu0 %v3838_v8  ;;  %2568 = vmatpush1.bf16.msra.mxu1 %v3841_v9  ;;  %v3877_v8 = vld [vmem:[#allocation4 + $0x208] ss:$16 sps:$4 sm:$0xff]   ;;  %v3882_v9 = vld [vmem:[#allocation4 + $0x224] ss:$16 sps:$4 sm:$0xff]  }
 0x12d   :  { %2483 = vmatprep.subr.bf16.mxu0 %v3846_v10  ;;  %2569 = vmatprep.subr.bf16.mxu1 %v3849_v11  ;;  %v3885_v10 = vld [vmem:[#allocation4 + $0x22c] ss:$16 sps:$4 sm:$0xff]   ;;  %v3880_v11 = vld [vmem:[#allocation4 + $0x220] ss:$16 sps:$4 sm:$0xff]  }
 0x130   :  { %2484 = vmatpush1.bf16.msra.mxu0 %v3844_v12  ;;  %2570 = vmatpush1.bf16.msra.mxu1 %v3847_v13  ;;  %v3883_v12 = vld [vmem:[#allocation4 + $0x228] ss:$16 sps:$4 sm:$0xff]   ;;  %v3888_v13 = vld [vmem:[#allocation4 + $0x244] ss:$16 sps:$4 sm:$0xff]  }
 0x131   :  { %2485 = vmatprep.subr.bf16.mxu0 %v3852_v14  ;;  %2571 = vmatprep.subr.bf16.mxu1 %v3855_v15  ;;  %v3891_v14 = vld [vmem:[#allocation4 + $0x24c] ss:$16 sps:$4 sm:$0xff]   ;;  %v3886_v15 = vld [vmem:[#allocation4 + $0x240] ss:$16 sps:$4 sm:$0xff]  }
 0x134   :  { %2486 = vmatpush1.bf16.msra.mxu0 %v3850_v16  ;;  %2572 = vmatpush1.bf16.msra.mxu1 %v3853_v17  ;;  %v3889_v16 = vld [vmem:[#allocation4 + $0x248] ss:$16 sps:$4 sm:$0xff]   ;;  %v3894_v17 = vld [vmem:[#allocation4 + $0x264] ss:$16 sps:$4 sm:$0xff]  }
 0x135   :  { %2487 = vmatprep.subr.bf16.mxu0 %v3858_v18  ;;  %2573 = vmatprep.subr.bf16.mxu1 %v3861_v19  ;;  %v3897_v18 = vld [vmem:[#allocation4 + $0x26c] ss:$16 sps:$4 sm:$0xff]   ;;  %v3892_v19 = vld [vmem:[#allocation4 + $0x260] ss:$16 sps:$4 sm:$0xff]  }
 0x138   :  { %2488 = vmatpush1.bf16.msra.mxu0 %v3856_v20  ;;  %2574 = vmatpush1.bf16.msra.mxu1 %v3859_v21  ;;  %v3895_v20 = vld [vmem:[#allocation4 + $0x268] ss:$16 sps:$4 sm:$0xff]   ;;  %v3900_v21 = vld [vmem:[#allocation4 + $0x284] ss:$16 sps:$4 sm:$0xff]  }
 0x139   :  { %2489 = vmatprep.subr.bf16.mxu0 %v3864_v22  ;;  %2575 = vmatprep.subr.bf16.mxu1 %v3867_v23  ;;  %v3903_v22 = vld [vmem:[#allocation4 + $0x28c] ss:$16 sps:$4 sm:$0xff]   ;;  %v3898_v23 = vld [vmem:[#allocation4 + $0x280] ss:$16 sps:$4 sm:$0xff]  }
 0x13c   :  { %2490 = vmatpush1.bf16.msra.mxu0 %v3862_v24  ;;  %2576 = vmatpush1.bf16.msra.mxu1 %v3865_v25  ;;  %v3901_v24 = vld [vmem:[#allocation4 + $0x288] ss:$16 sps:$4 sm:$0xff]   ;;  %v3906_v25 = vld [vmem:[#allocation4 + $0x2a4] ss:$16 sps:$4 sm:$0xff]  }
 0x13d   :  { %2491 = vmatprep.subr.bf16.mxu0 %v3870_v26  ;;  %2577 = vmatprep.subr.bf16.mxu1 %v3873_v27  ;;  %v3909_v26 = vld [vmem:[#allocation4 + $0x2ac] ss:$16 sps:$4 sm:$0xff]   ;;  %v3904_v27 = vld [vmem:[#allocation4 + $0x2a0] ss:$16 sps:$4 sm:$0xff]  }
 0x140   :  { %2492 = vmatpush1.bf16.msra.mxu0 %v3868_v28  ;;  %2578 = vmatpush1.bf16.msra.mxu1 %v3871_v29  ;;  %v3907_v28 = vld [vmem:[#allocation4 + $0x2a8] ss:$16 sps:$4 sm:$0xff]   ;;  %v3912_v29 = vld [vmem:[#allocation4 + $0x2c4] ss:$16 sps:$4 sm:$0xff]  }
 0x141   :  { %2504 = vmatprep.subr.bf16.mxu0 %v3876_v30  ;;  %2590 = vmatprep.subr.bf16.mxu1 %v3879_v31  ;;  %v3915_v30 = vld [vmem:[#allocation4 + $0x2cc] ss:$16 sps:$4 sm:$0xff]   ;;  %v3910_v31 = vld [vmem:[#allocation4 + $0x2c0] ss:$16 sps:$4 sm:$0xff]  }
 0x1d6   :  { %v1478_v43 = vpop.f32.mrb[0].mxu0  ;;  %v1650_v44 = vpop.f32.mrb[0].mxu1 }
 0x1d7   :  { %v3422_v45 = vadd.f32 %v1478_v43, %v294_v39  ;;  %v3426_v46 = vadd.f32 %v1650_v44, %v302_v40  ;;  %v1480_v47 = vpop.f32.mrb[1].mxu0  ;;  %v1652_v48 = vpop.f32.mrb[1].mxu1  ;;  %v3927_v43 = vld [vmem:[#allocation4 + $0x30c] ss:$16 sps:$4 sm:$0xff]   ;;  %v3922_v44 = vld [vmem:[#allocation4 + $0x300] ss:$16 sps:$4 sm:$0xff]  }
 0x1d8   :  { %v3423_v49 = vadd.f32 %v1480_v47, %v298_v41  ;;  %v3427_v50 = vadd.f32 %v1652_v48, %v306_v42  ;;  %v1482_v51 = vpop.f32.mrb[2].mxu0  ;;  %v1654_v52 = vpop.f32.mrb[2].mxu1  ;;  %v3933_v47 = vld [vmem:[#allocation4 + $0x32c] ss:$16 sps:$4 sm:$0xff]   ;;  %v3928_v48 = vld [vmem:[#allocation4 + $0x320] ss:$16 sps:$4 sm:$0xff]  }
 0x1d9   :  { %v3424_v53 = vadd.f32 %v1482_v51, %v294_v39  ;;  %v3428_v54 = vadd.f32 %v1654_v52, %v302_v40  ;;  %v1484_v55 = vpop.f32.mrb[3].mxu0  ;;  %v1656_v56 = vpop.f32.mrb[3].mxu1  ;;  %v1659_v59 = vmax.f32 %v3422_v45, 0.0  ;;  %v1661_v60 = vmax.f32 %v3426_v46, 0.0  ;;  %v3921_v39 = vld [vmem:[#allocation4 + $0x2ec] ss:$16 sps:$4 sm:$0xff]  }
 0x1da   :  { %v3425_v57 = vadd.f32 %v1484_v55, %v298_v41  ;;  %v3429_v58 = vadd.f32 %v1656_v56, %v306_v42  ;;  %v1660_v63 = vmax.f32 %v3423_v49, 0.0  ;;  %v1662_v0 = vmax.f32 %v3427_v50, 0.0  ;;  %v3916_v40 = vld [vmem:[#allocation4 + $0x2e0] ss:$16 sps:$4 sm:$0xff]   ;;  %v3919_v41 = vld [vmem:[#allocation4 + $0x2e8] ss:$16 sps:$4 sm:$0xff]  }
 0x1db   :  { %v1663_v61 = vmax.f32 %v3424_v53, 0.0  ;;  %v1665_v62 = vmax.f32 %v3428_v54, 0.0  ;;  %v3924_v42 = vld [vmem:[#allocation4 + $0x304] ss:$16 sps:$4 sm:$0xff]   ;;  %v3925_v45 = vld [vmem:[#allocation4 + $0x308] ss:$16 sps:$4 sm:$0xff]  }
 0x1dc   :  { %v1664_v1 = vmax.f32 %v3425_v57, 0.0  ;;  %v1666_v2 = vmax.f32 %v3429_v58, 0.0  ;;  %v3930_v46 = vld [vmem:[#allocation4 + $0x324] ss:$16 sps:$4 sm:$0xff]   ;;  %v3931_v49 = vld [vmem:[#allocation4 + $0x328] ss:$16 sps:$4 sm:$0xff]  }
 0x1dd   :  { %v1667_v3 = vpack.c.bf16 %v1663_v61, %v1659_v59  ;;  %v4222_v4 = vpack.c.bf16 %v1665_v62, %v1661_v60  ;;  %v3936_v50 = vld [vmem:[#allocation4 + $0x344] ss:$16 sps:$4 sm:$0xff]   ;;  %v3939_v51 = vld [vmem:[#allocation4 + $0x34c] ss:$16 sps:$4 sm:$0xff]   ;;  %v3934_v52 = vld [vmem:[#allocation4 + $0x340] ss:$16 sps:$4 sm:$0xff]  }
 0x1de   :  { %v1668_v5 = vpack.c.bf16 %v1664_v1, %v1660_v63  ;;  %v1670_v6 = vpack.c.bf16 %v1666_v2, %v1662_v0  ;;  %v3937_v53 = vld [vmem:[#allocation4 + $0x348] ss:$16 sps:$4 sm:$0xff]   ;;  %v3942_v54 = vld [vmem:[#allocation4 + $0x364] ss:$16 sps:$4 sm:$0xff]   ;;  %v3945_v55 = vld [vmem:[#allocation4 + $0x36c] ss:$16 sps:$4 sm:$0xff]  }
 0x1df   :  { %v3940_v56 = vld [vmem:[#allocation4 + $0x360] ss:$16 sps:$4 sm:$0xff]   ;;  %v3943_v57 = vld [vmem:[#allocation4 + $0x368] ss:$16 sps:$4 sm:$0xff]   ;;  %v3948_v58 = vld [vmem:[#allocation4 + $0x384] ss:$16 sps:$4 sm:$0xff]  }
 0x1e0   :  { %2493 = vmatprep.mubr.bf16.mxu0 %v1668_v5  ;;  %2579 = vmatprep.mubr.bf16.mxu1 %v1668_v5  ;;  %v3951_v59 = vld [vmem:[#allocation4 + $0x38c] ss:$16 sps:$4 sm:$0xff]   ;;  %v3946_v60 = vld [vmem:[#allocation4 + $0x380] ss:$16 sps:$4 sm:$0xff]   ;;  %v3949_v61 = vld [vmem:[#allocation4 + $0x388] ss:$16 sps:$4 sm:$0xff]  }
 0x1e1   :  { %2494 = vmatmul.mubr.bf16.vlgmr.msra.gmra.mrb[4].mxu0 %v1667_v3  ;;  %2580 = vmatmul.mubr.bf16.vlgmr.msra.gmra.mrb[4].mxu1 %v1667_v3  ;;  %v3954_v62 = vld [vmem:[#allocation4 + $0x3a4] ss:$16 sps:$4 sm:$0xff]   ;;  %v3957_v63 = vld [vmem:[#allocation4 + $0x3ac] ss:$16 sps:$4 sm:$0xff]   ;;  %v3952_v0 = vld [vmem:[#allocation4 + $0x3a0] ss:$16 sps:$4 sm:$0xff]  }
 0x1e2   :  { %2505 = vmatpush1.bf16.msra.mxu0 %v3874_v7  ;;  %2591 = vmatpush1.bf16.msra.mxu1 %v3877_v8  ;;  %v3955_v1 = vld [vmem:[#allocation4 + $0x3a8] ss:$16 sps:$4 sm:$0xff]   ;;  %v3960_v2 = vld [vmem:[#allocation4 + $0x3c4] ss:$16 sps:$4 sm:$0xff]   ;;  %v3963_v3 = vld [vmem:[#allocation4 + $0x3cc] ss:$16 sps:$4 sm:$0xff]  }
 0x1e3   :  { %2536 = vmatprep.mubr.bf16.mxu0 %v1670_v6  ;;  %2622 = vmatprep.mubr.bf16.mxu1 %v1670_v6  ;;  %v3958_v5 = vld [vmem:[#allocation4 + $0x3c0] ss:$16 sps:$4 sm:$0xff]   ;;  %v3961_v6 = vld [vmem:[#allocation4 + $0x3c8] ss:$16 sps:$4 sm:$0xff]   ;;  %v3966_v7 = vld [vmem:[#allocation4 + $0x3e4] ss:$16 sps:$4 sm:$0xff]  }
 0x1e4   :  { %2506 = vmatprep.subr.bf16.mxu0 %v3882_v9  ;;  %2592 = vmatprep.subr.bf16.mxu1 %v3885_v10  ;;  %v3969_v8 = vld [vmem:[#allocation4 + $0x3ec] ss:$16 sps:$4 sm:$0xff]   ;;  %v3964_v9 = vld [vmem:[#allocation4 + $0x3e0] ss:$16 sps:$4 sm:$0xff]   ;;  %v3967_v10 = vld [vmem:[#allocation4 + $0x3e8] ss:$16 sps:$4 sm:$0xff]  }
 0x1e6   :  { %2507 = vmatpush1.bf16.msra.mxu0 %v3880_v11  ;;  %2593 = vmatpush1.bf16.msra.mxu1 %v3883_v12  ;;  %v3970_v11 = vld [vmem:[#allocation6 + $0x40] sm:$0xff]  }
 0x1e7   :  { %2508 = vmatprep.subr.bf16.mxu0 %v3888_v13  ;;  %2594 = vmatprep.subr.bf16.mxu1 %v3891_v14  ;;  %v3971_v12 = vld [vmem:[#allocation6 + $0xc0] sm:$0xff]  }
 0x1e8   :  { %v3972_v13 = vld [vmem:[#allocation6] sm:$0xff]  }
 0x1e9   :  { %v3973_v14 = vld [vmem:[#allocation6 + $0x80] sm:$0xff]  }
 0x1ea   :  { %2509 = vmatpush1.bf16.msra.mxu0 %v3886_v15  ;;  %2595 = vmatpush1.bf16.msra.mxu1 %v3889_v16  ;;  %v3974_v15 = vld [vmem:[#allocation6 + $0x48] sm:$0xff]  }
 0x1eb   :  { %2510 = vmatprep.subr.bf16.mxu0 %v3894_v17  ;;  %2596 = vmatprep.subr.bf16.mxu1 %v3897_v18  ;;  %v3975_v16 = vld [vmem:[#allocation6 + $0xc8] sm:$0xff]  }
 0x1ec   :  { %v3976_v17 = vld [vmem:[#allocation6 + $0x8] sm:$0xff]  }
 0x1ed   :  { %v3977_v18 = vld [vmem:[#allocation6 + $0x88] sm:$0xff]  }
 0x1ee   :  { %2511 = vmatpush1.bf16.msra.mxu0 %v3892_v19  ;;  %2597 = vmatpush1.bf16.msra.mxu1 %v3895_v20  ;;  %v3978_v19 = vld [vmem:[#allocation6 + $0x50] sm:$0xff]  }
 0x1ef   :  { %2512 = vmatprep.subr.bf16.mxu0 %v3900_v21  ;;  %2598 = vmatprep.subr.bf16.mxu1 %v3903_v22  ;;  %v3979_v20 = vld [vmem:[#allocation6 + $0xd0] sm:$0xff]  }
 0x1f0   :  { %v3980_v21 = vld [vmem:[#allocation6 + $0x10] sm:$0xff]  }
 0x1f1   :  { %v3981_v22 = vld [vmem:[#allocation6 + $0x90] sm:$0xff]  }
 0x1f2   :  { %2513 = vmatpush1.bf16.msra.mxu0 %v3898_v23  ;;  %2599 = vmatpush1.bf16.msra.mxu1 %v3901_v24  ;;  %v3982_v23 = vld [vmem:[#allocation6 + $0x58] sm:$0xff]  }
 0x1f3   :  { %2514 = vmatprep.subr.bf16.mxu0 %v3906_v25  ;;  %2600 = vmatprep.subr.bf16.mxu1 %v3909_v26  ;;  %v3983_v24 = vld [vmem:[#allocation6 + $0xd8] sm:$0xff]   ;;  %v3986_v26 = vld [vmem:[#allocation6 + $0x60] sm:$0xff]  }
 0x1f4   :  { %v3984_v25 = vld [vmem:[#allocation6 + $0x18] sm:$0xff]  }
 0x1f6   :  { %2515 = vmatpush1.bf16.msra.mxu0 %v3904_v27  ;;  %2601 = vmatpush1.bf16.msra.mxu1 %v3907_v28  ;;  %v3987_v27 = vld [vmem:[#allocation6 + $0xe0] sm:$0xff]  }
 0x1f7   :  { %2516 = vmatprep.subr.bf16.mxu0 %v3912_v29  ;;  %2602 = vmatprep.subr.bf16.mxu1 %v3915_v30  ;;  %v3988_v28 = vld [vmem:[#allocation6 + $0x20] sm:$0xff]   ;;  %v3990_v30 = vld [vmem:[#allocation6 + $0x68] sm:$0xff]  }
 0x1f8   :  { %v3989_v29 = vld [vmem:[#allocation6 + $0xa0] sm:$0xff]  }
 0x1fa   :  { %2517 = vmatpush1.bf16.msra.mxu0 %v3910_v31  ;;  %2603 = vmatpush1.bf16.msra.mxu1 %v3913_v32  ;;  %v3991_v31 = vld [vmem:[#allocation6 + $0xe8] sm:$0xff]  }
 0x1fb   :  { %2518 = vmatprep.subr.bf16.mxu0 %v3918_v36  ;;  %2604 = vmatprep.subr.bf16.mxu1 %v3921_v39  ;;  %v3992_v32 = vld [vmem:[#allocation6 + $0x28] sm:$0xff]   ;;  %v3994_v39 = vld [vmem:[#allocation6 + $0x70] sm:$0xff]  }
 0x1fc   :  { %v3993_v36 = vld [vmem:[#allocation6 + $0xa8] sm:$0xff]  }
 0x1fe   :  { %2519 = vmatpush1.bf16.msra.mxu0 %v3916_v40  ;;  %2605 = vmatpush1.bf16.msra.mxu1 %v3919_v41  ;;  %v3995_v40 = vld [vmem:[#allocation6 + $0xf0] sm:$0xff]  }
 0x1ff   :  { %2520 = vmatprep.subr.bf16.mxu0 %v3924_v42  ;;  %2606 = vmatprep.subr.bf16.mxu1 %v3927_v43  ;;  %v3996_v41 = vld [vmem:[#allocation6 + $0x30] sm:$0xff]   ;;  %v3998_v43 = vld [vmem:[#allocation6 + $0x78] sm:$0xff]  }
 0x200   :  { %v3997_v42 = vld [vmem:[#allocation6 + $0xb0] sm:$0xff]  }
 0x202   :  { %2521 = vmatpush1.bf16.msra.mxu0 %v3922_v44  ;;  %2607 = vmatpush1.bf16.msra.mxu1 %v3925_v45  ;;  %v3999_v44 = vld [vmem:[#allocation6 + $0xf8] sm:$0xff]  }
 0x203   :  { %2522 = vmatprep.subr.bf16.mxu0 %v3930_v46  ;;  %2608 = vmatprep.subr.bf16.mxu1 %v3933_v47  ;;  %v4000_v45 = vld [vmem:[#allocation6 + $0x38] sm:$0xff]   ;;  %v1799_v47 = vld [vmem:[%s4247_s4] sm:$0xf] }
 0x204   :  { %v4001_v46 = vld [vmem:[#allocation6 + $0xb8] sm:$0xff]  }
 0x206   :  { %2523 = vmatpush1.bf16.msra.mxu0 %v3928_v48  ;;  %2609 = vmatpush1.bf16.msra.mxu1 %v3931_v49  ;;  %v1804_v48 = vrot.slane %v1799_v47, %v293_v34  ;;  %v1812_v49 = vrot.slane %v1799_v47, %v301_v35 }
 0x207   :  { %2524 = vmatprep.subr.bf16.mxu0 %v3936_v50  ;;  %2610 = vmatprep.subr.bf16.mxu1 %v3939_v51  ;;  %v1808_v50 = vrot.slane %v1799_v47, %v297_v37  ;;  %v1816_v51 = vrot.slane %v1799_v47, %v305_v38 }
 0x20a   :  { %2525 = vmatpush1.bf16.msra.mxu0 %v3934_v52  ;;  %2611 = vmatpush1.bf16.msra.mxu1 %v3937_v53 }
 0x20b   :  { %2526 = vmatprep.subr.bf16.mxu0 %v3942_v54  ;;  %2612 = vmatprep.subr.bf16.mxu1 %v3945_v55 }
 0x20e   :  { %2527 = vmatpush1.bf16.msra.mxu0 %v3940_v56  ;;  %2613 = vmatpush1.bf16.msra.mxu1 %v3943_v57 }
 0x20f   :  { %2528 = vmatprep.subr.bf16.mxu0 %v3948_v58  ;;  %2614 = vmatprep.subr.bf16.mxu1 %v3951_v59 }
 0x212   :  { %2529 = vmatpush1.bf16.msra.mxu0 %v3946_v60  ;;  %2615 = vmatpush1.bf16.msra.mxu1 %v3949_v61 }
 0x213   :  { %2530 = vmatprep.subr.bf16.mxu0 %v3954_v62  ;;  %2616 = vmatprep.subr.bf16.mxu1 %v3957_v63 }
 0x216   :  { %2531 = vmatpush1.bf16.msra.mxu0 %v3952_v0  ;;  %2617 = vmatpush1.bf16.msra.mxu1 %v3955_v1 }
 0x217   :  { %2532 = vmatprep.subr.bf16.mxu0 %v3960_v2  ;;  %2618 = vmatprep.subr.bf16.mxu1 %v3963_v3 }
 0x21a   :  { %2533 = vmatpush1.bf16.msra.mxu0 %v3958_v5  ;;  %2619 = vmatpush1.bf16.msra.mxu1 %v3961_v6 }
 0x21b   :  { %2534 = vmatprep.subr.bf16.mxu0 %v3966_v7  ;;  %2620 = vmatprep.subr.bf16.mxu1 %v3969_v8 }
 0x21e   :  { %2535 = vmatpush1.bf16.msra.mxu0 %v3964_v9  ;;  %2621 = vmatpush1.bf16.msra.mxu1 %v3967_v10 }
 0x21f   :  { %3378 = vmatprep.subr.bf16.mxu0 %v3970_v11  ;;  %3400 = vmatprep.subr.bf16.mxu1 %v3971_v12 }
 0x221   :  { %2537 = vmatmul.mubr.bf16.vlgmr.msra.gmra.mrb[4].mxu0 %v4222_v4  ;;  %2623 = vmatmul.mubr.bf16.vlgmr.msra.gmra.mrb[4].mxu1 %v4222_v4  ;;  %v3985_v4 = vld [vmem:[#allocation6 + $0x98] sm:$0xff]  }
 0x222   :  { %3379 = vmatpush3.bf16.msra.mxu0 %v3972_v13  ;;  %3401 = vmatpush3.bf16.msra.mxu1 %v3973_v14  ;;  %v3336_v14 = vld [vmem:[%s4249_s6] ss:$0 sm:$0xff] }
 0x223   :  { %3380 = vmatprep.subr.bf16.mxu0 %v3974_v15  ;;  %3402 = vmatprep.subr.bf16.mxu1 %v3975_v16 }
 0x226   :  { %3381 = vmatpush3.bf16.msra.mxu0 %v3976_v17  ;;  %3403 = vmatpush3.bf16.msra.mxu1 %v3977_v18 }
 0x227   :  { %3382 = vmatprep.subr.bf16.mxu0 %v3978_v19  ;;  %3404 = vmatprep.subr.bf16.mxu1 %v3979_v20 }
 0x22a   :  { %3383 = vmatpush3.bf16.msra.mxu0 %v3980_v21  ;;  %3405 = vmatpush3.bf16.msra.mxu1 %v3981_v22 }
 0x22b   :  { %3384 = vmatprep.subr.bf16.mxu0 %v3982_v23  ;;  %3406 = vmatprep.subr.bf16.mxu1 %v3983_v24 }
 0x22e   :  { %3385 = vmatpush3.bf16.msra.mxu0 %v3984_v25  ;;  %3407 = vmatpush3.bf16.msra.mxu1 %v3985_v4 }
 0x22f   :  { %3386 = vmatprep.subr.bf16.mxu0 %v3986_v26  ;;  %3408 = vmatprep.subr.bf16.mxu1 %v3987_v27 }
 0x232   :  { %3387 = vmatpush3.bf16.msra.mxu0 %v3988_v28  ;;  %3409 = vmatpush3.bf16.msra.mxu1 %v3989_v29 }
 0x233   :  { %3388 = vmatprep.subr.bf16.mxu0 %v3990_v30  ;;  %3410 = vmatprep.subr.bf16.mxu1 %v3991_v31 }
 0x236   :  { %3389 = vmatpush3.bf16.msra.mxu0 %v3992_v32  ;;  %3411 = vmatpush3.bf16.msra.mxu1 %v3993_v36 }
 0x237   :  { %3390 = vmatprep.subr.bf16.mxu0 %v3994_v39  ;;  %3412 = vmatprep.subr.bf16.mxu1 %v3995_v40 }
 0x23a   :  { %3391 = vmatpush3.bf16.msra.mxu0 %v3996_v41  ;;  %3413 = vmatpush3.bf16.msra.mxu1 %v3997_v42 }
 0x23b   :  { %3392 = vmatprep.subr.bf16.mxu0 %v3998_v43  ;;  %3414 = vmatprep.subr.bf16.mxu1 %v3999_v44 }
 0x23e   :  { %3393 = vmatpush3.bf16.msra.mxu0 %v4000_v45  ;;  %3415 = vmatpush3.bf16.msra.mxu1 %v4001_v46 }
 0x2f4   :  { %v2538_v52 = vpop.f32.mrb[4].mxu0  ;;  %v2624_v53 = vpop.f32.mrb[4].mxu1 }
 0x2f5   :  { %v3430_v54 = vadd.f32 %v2538_v52, %v1804_v48  ;;  %v3434_v55 = vadd.f32 %v2624_v53, %v1812_v49  ;;  %v2540_v56 = vpop.f32.mrb[5].mxu0  ;;  %v2626_v57 = vpop.f32.mrb[5].mxu1 }
 0x2f6   :  { %v3431_v58 = vadd.f32 %v2540_v56, %v1808_v50  ;;  %v3435_v59 = vadd.f32 %v2626_v57, %v1816_v51  ;;  %v2542_v60 = vpop.f32.mrb[6].mxu0  ;;  %v2628_v61 = vpop.f32.mrb[6].mxu1 }
 0x2f7   :  { %v3432_v34 = vadd.f32 %v2542_v60, %v1804_v48  ;;  %v3436_v62 = vadd.f32 %v2628_v61, %v1812_v49  ;;  %v2544_v63 = vpop.f32.mrb[7].mxu0  ;;  %v2630_v35 = vpop.f32.mrb[7].mxu1  ;;  %v2633_v37 = vmax.f32 %v3430_v54, 0.0  ;;  %v2635_v2 = vmax.f32 %v3434_v55, 0.0 }
 0x2f8   :  { %v3433_v0 = vadd.f32 %v2544_v63, %v1808_v50  ;;  %v3437_v1 = vadd.f32 %v2630_v35, %v1816_v51  ;;  %v2634_v3 = vmax.f32 %v3431_v58, 0.0  ;;  %v2636_v5 = vmax.f32 %v3435_v59, 0.0 }
 0x2f9   :  { %v2637_v33 = vmax.f32 %v3432_v34, 0.0  ;;  %v2639_v38 = vmax.f32 %v3436_v62, 0.0 }
 0x2fa   :  { %v2638_v6 = vmax.f32 %v3433_v0, 0.0  ;;  %v2640_v7 = vmax.f32 %v3437_v1, 0.0 }
 0x2fb   :  { %v2641_v8 = vpack.c.bf16 %v2637_v33, %v2633_v37  ;;  %v2643_v9 = vpack.c.bf16 %v2639_v38, %v2635_v2 }
 0x2fc   :  { %v2642_v10 = vpack.c.bf16 %v2638_v6, %v2634_v3  ;;  %v2644_v11 = vpack.c.bf16 %v2640_v7, %v2636_v5 }
 0x2fe   :  { %2940 = vmatprep.mubr.bf16.mxu0 %v2642_v10  ;;  %2981 = vmatprep.mubr.bf16.mxu1 %v2644_v11 }
 0x2ff   :  { %2941 = vmatmul.mubr.bf16.vlgmr.msra.gmra.mrb[8].mxu0 %v2641_v8  ;;  %2982 = vmatmul.mubr.bf16.vlgmr.msra.gmra.mrb[8].mxu1 %v2643_v9 }
 0x3d2   :  { %v3394_v12 = vpop.f32.mrb[8].mxu0  ;;  %v3416_v13 = vpop.f32.mrb[8].mxu1 }
 0x3d3   :  { %v3395_v15 = vpop.f32.mrb[9].mxu0  ;;  %v3417_v16 = vpop.f32.mrb[9].mxu1 }
 0x3d4   :  { %v3396_v17 = vadd.f32 %v3395_v15, %v3394_v12  ;;  %v3418_v18 = vadd.f32 %v3417_v16, %v3416_v13  ;;  %v3397_v19 = vpop.f32.mrb[10].mxu0  ;;  %v3419_v20 = vpop.f32.mrb[10].mxu1 }
 0x3d5   :  { %v3398_v21 = vpop.f32.mrb[11].mxu0  ;;  %v3420_v22 = vpop.f32.mrb[11].mxu1 }
 0x3d6   :  { %v2943_v23 = vadd.f32 %v3396_v17, %v3336_v14  ;;  %v3399_v24 = vadd.f32 %v3398_v21, %v3397_v19  ;;  %v3421_v25 = vadd.f32 %v3420_v22, %v3419_v20 }
 0x3d8   :  { %v2984_v4 = vadd.f32 %v3418_v18, %v2943_v23  ;;  %v2946_v26 = vadd.f32 %v3399_v24, %v3336_v14 }
 0x3da   :  { %v2987_v27 = vadd.f32 %v3421_v25, %v2946_v26 }
 0x3dc   :  { %v3376_v28 = vpack.c.bf16 %v2987_v27, %v2984_v4 }
 0x3de   :  { %3377 = vst [vmem:[%s4250_s7] sm:$0xff] %v3376_v28  }
 0x3df   :  { %3004 = vsyncpa [#allocation3], 1 }
 0x3e0   :  { %3005 = vsyncpa [#allocation5], 1 }

</bundles_post_ra>
